<compile_context>
chip_gen: v5e
topology: v5e:2x2
jax: 0.10.0
libtpu: 0.0.40
codegen_flags: <defaults>
</compile_context>

<pallas_src>
import jax
import jax.numpy as jnp
from jax.experimental import pallas as pl
from jax.experimental.pallas import tpu as pltpu


def _make_fp_kernel(has_pf: bool, k_nn: int, idx_bits: int):
    """Fused 3-NN inverse-distance interpolation + SharedMLP for one (batch, N-tile)."""

    keep_mask = ~((1 << idx_bits) - 1)   # clears the index bits of a packed key
    consumed = (1 << 31) - 1              # > any finite-f32 key; marks used neighbors

    def kernel(*refs):
        if has_pf:
            (pc_ref, cc_ref, cf_ref, pf_ref,
             w1a_ref, w1b_ref, b1_ref, w2_ref, b2_ref, out_ref) = refs
        else:
            (pc_ref, cc_ref, cf_ref,
             w1a_ref, b1_ref, w2_ref, b2_ref, out_ref) = refs

        pc = pc_ref[0]          # (3, TN)   f32, points on lanes (native layout)
        cc = cc_ref[0]          # (M, 3)    f32, centers on sublanes
        cf = cf_ref[0]          # (Cc, M)   bf16, native layout

        m = cc.shape[0]
        tn = pc.shape[1]

        # ---- pairwise squared distances on the VPU (non-negative by construction).
        # Initialize from the first coordinate (no zeros temp); only d2 stays live. ----
        diff = cc[:, 0:1] - pc[0:1, :]                     # (M,1) - (1,TN) -> (M,TN)
        d2 = diff * diff
        for k in (1, 2):
            diff = cc[:, k:k + 1] - pc[k:k + 1, :]
            d2 = d2 + diff * diff

        # ---- k_nn nearest centers with a SINGLE sublane reduction per neighbor.
        # d2 >= 0, so its f32 bit pattern is order-preserving as int32; replace the
        # low idx_bits mantissa bits with the center index so one jnp.min returns
        # both the (truncated) min distance and its argmin.  Truncation error is
        # <= 2^idx_bits ULPs of d2 (~1e-4 relative for M <= 4096). ----
        sub_idx = jax.lax.broadcasted_iota(jnp.int32, (m, 1), 0)           # (M,1)
        keys = (pltpu.bitcast(d2, jnp.int32) & jnp.int32(keep_mask)) | sub_idx

        wmat = jnp.zeros((m, tn), jnp.float32)
        norm = jnp.zeros((1, tn), jnp.float32)
        for _ in range(k_nn):
            kmin = jnp.min(keys, axis=0, keepdims=True)                     # (1, TN)
            dmin = pltpu.bitcast(kmin & jnp.int32(keep_mask), jnp.float32)  # min d2
            hit = keys == kmin          # exactly one row per column (index is in key)
            r = 1.0 / (dmin + 1e-8)     # PVCNN eps, exact f32 reciprocal
            wmat = wmat + jnp.where(hit, r, 0.0)
            norm = norm + r
            keys = jnp.where(hit, jnp.int32(consumed), keys)
        # normalize in f32, then quantize the dense scatter matrix for the MXU
        wmat = (wmat * (1.0 / norm)).astype(jnp.bfloat16)
        # TODO(synk): for M >> ~1024 stream the 3-NN and the interpolation matmul over
        # M-chunks (running best-3 state) instead of dense (M, TN) temporaries.

        # ---- interpolation: (Cc, M) @ (M, TN) on the MXU (bf16 in, f32 acc) ----
        interp = jnp.dot(cf, wmat, preferred_element_type=jnp.float32)     # (Cc, TN)

        # ---- SharedMLP: per-point 1x1 conv (+ folded eval-mode BN) + ReLU, 2 layers.
        # The channel concat [interp, points_features] is folded into split W1. ----
        h = jnp.dot(w1a_ref[...], interp.astype(jnp.bfloat16),
                    preferred_element_type=jnp.float32)                    # (H1, TN)
        if has_pf:
            h = h + jnp.dot(w1b_ref[...], pf_ref[0],
                            preferred_element_type=jnp.float32)
        h = jnp.maximum(h + b1_ref[...], 0.0)
        out = jnp.dot(w2_ref[...], h.astype(jnp.bfloat16),
                      preferred_element_type=jnp.float32) + b2_ref[...]    # (H2, TN)
        out_ref[0] = jnp.maximum(out, 0.0).astype(out_ref.dtype)

    return kernel


def _round_up(x, m):
    return ((x + m - 1) // m) * m


def pointnet_fp_module(points_coords, centers_coords, centers_features,
                       points_features, params, *, tile_n=512):
    """Inputs use PyTorch layout: (B,3,N), (B,3,M), (B,Cc,M), (B,Cp,N) or None.

    params = (w1a, w1b, b1, w2, b2), channels-first:
        w1a (H1, Cc), w1b (H1, Cp) or None, b1 (H1, 1), w2 (H2, H1), b2 (H2, 1).
    Returns (out (B, H2, N) float32, points_coords).
    """
    w1a, w1b, b1, w2, b2 = params
    B, _, N = points_coords.shape
    M = centers_coords.shape[2]
    Cc = centers_features.shape[1]
    H1 = w1a.shape[0]
    H2 = w2.shape[0]
    has_pf = points_features is not None
    # TODO(synk): PyTorch three_nn always returns 3 neighbors (repeating when M < 3);
    # here fewer neighbors are used instead when M < 3.
    k_nn = min(3, M)

    # ---- generation-aware VMEM budget (128 MiB on v5e/v6e, 64 MiB on v7x) ----
    try:
        vmem_cap = int(pltpu.get_tpu_info().vmem_capacity_bytes)
    except Exception:
        vmem_cap = 64 * 1024 * 1024
    vmem_limit = max(32 * 1024 * 1024, min(vmem_cap * 3 // 4, 96 * 1024 * 1024))

    # ---- pad M to a sublane multiple; sentinel centers are far away with zero
    # features and never win the 3-NN (k_nn is capped at the real M). ----
    M_pad = max(8, _round_up(M, 8))
    idx_bits = max(1, (M_pad - 1).bit_length())

    # ---- N tiling: TN is always a multiple of 128 so every (., TN) tile (in
    # particular the output store) is lane-dense / unmasked. ----
    TN = min(_round_up(tile_n, 128), _round_up(N, 128))
    # keep the handful of live dense (M_pad, TN) f32 temporaries well inside VMEM
    while TN > 128 and 6 * M_pad * TN * 4 > vmem_limit // 3:
        TN -= 128
    # make sure both v7x TensorCores get work if the grid would otherwise be 1x1
    if B * ((N + TN - 1) // TN) < 2 and TN >= 256:
        TN = max(128, (TN // 2) // 128 * 128)
    N_pad = _round_up(N, TN)
    NT = N_pad // TN

    pc = points_coords.astype(jnp.float32)                               # (B, 3, N)  native
    cc = jnp.transpose(centers_coords, (0, 2, 1)).astype(jnp.float32)    # (B, M, 3)  tiny
    cf = centers_features.astype(jnp.bfloat16)                           # (B, Cc, M) native
    if N_pad != N:
        pc = jnp.pad(pc, ((0, 0), (0, 0), (0, N_pad - N)))
    if M_pad != M:
        cc = jnp.pad(cc, ((0, 0), (0, M_pad - M), (0, 0)), constant_values=1e6)
        cf = jnp.pad(cf, ((0, 0), (0, 0), (0, M_pad - M)))

    args = [pc, cc, cf]
    if has_pf:
        pf = points_features.astype(jnp.bfloat16)                        # (B, Cp, N) native
        if N_pad != N:
            pf = jnp.pad(pf, ((0, 0), (0, 0), (0, N_pad - N)))
        Cp = pf.shape[1]
        args.append(pf)
    args.append(w1a.astype(jnp.bfloat16))
    if has_pf:
        args.append(w1b.astype(jnp.bfloat16))
    args += [b1.astype(jnp.float32), w2.astype(jnp.bfloat16), b2.astype(jnp.float32)]

    def build_in_specs(resident):
        # `resident` = {"pipeline_mode": pl.Buffered(1)} single-buffers blocks whose
        # index_map is constant along the inner N axis (they only change at batch
        # boundaries), halving their VMEM footprint.  Tiled (., TN) blocks stay
        # double-buffered for DMA/compute overlap.
        specs = [
            pl.BlockSpec((1, 3, TN), lambda b, t: (b, 0, t)),
            pl.BlockSpec((1, M_pad, 3), lambda b, t: (b, 0, 0), **resident),
            pl.BlockSpec((1, Cc, M_pad), lambda b, t: (b, 0, 0), **resident),
        ]
        if has_pf:
            specs.append(pl.BlockSpec((1, Cp, TN), lambda b, t: (b, 0, t)))
        specs.append(pl.BlockSpec((H1, Cc), lambda b, t: (0, 0), **resident))
        if has_pf:
            specs.append(pl.BlockSpec((H1, Cp), lambda b, t: (0, 0), **resident))
        specs += [
            pl.BlockSpec((H1, 1), lambda b, t: (0, 0), **resident),
            pl.BlockSpec((H2, H1), lambda b, t: (0, 0), **resident),
            pl.BlockSpec((H2, 1), lambda b, t: (0, 0), **resident),
        ]
        return specs

    def run(in_specs):
        return pl.pallas_call(
            _make_fp_kernel(has_pf, k_nn, idx_bits),
            out_shape=jax.ShapeDtypeStruct((B, H2, N_pad), jnp.float32),
            grid_spec=pltpu.PrefetchScalarGridSpec(
                num_scalar_prefetch=0,
                grid=(B, NT),
                in_specs=in_specs,
                out_specs=pl.BlockSpec((1, H2, TN), lambda b, t: (b, 0, t)),
            ),
            compiler_params=pltpu.CompilerParams(
                dimension_semantics=("parallel", "parallel"),
                vmem_limit_bytes=int(vmem_limit),
            ),
        )(*args)

    try:
        out = run(build_in_specs({"pipeline_mode": pl.Buffered(1)}))
    except Exception:
        # fall back for jax versions without BlockSpec.pipeline_mode / pl.Buffered
        out = run(build_in_specs({}))

    if N_pad != N:
        out = out[:, :, :N]
    return out, points_coords


def init_params(key, cc, cp, hidden):
    """SharedMLP params: [Conv1d(Cin,H,1), BN1d(H), ReLU] x len(hidden).
    Conv bias + eval-mode BatchNorm are folded into channels-first (W_eff, b_eff)."""
    # TODO(synk): train-mode BatchNorm (batch statistics over B*N) not implemented;
    # the eval-mode running-stats fold is used instead.
    h1, h2 = hidden
    cin1 = cc + cp
    ks = jax.random.split(key, 6)

    def conv_w(k, cin, cout):
        bound = 1.0 / jnp.sqrt(jnp.float32(cin))
        return jax.random.uniform(k, (cout, cin), jnp.float32, -bound, bound)

    def conv_b(k, cin, cout):
        bound = 1.0 / jnp.sqrt(jnp.float32(cin))
        return jax.random.uniform(k, (cout, 1), jnp.float32, -bound, bound)

    def bn(k, c):
        # Fresh nn.BatchNorm1d would be identity (gamma=1, beta=0, mean=0, var=1);
        # use deterministic non-trivial stats to exercise the fold.
        kg, kb, km, kv = jax.random.split(k, 4)
        gamma = 1.0 + 0.1 * jax.random.normal(kg, (c, 1), jnp.float32)
        beta = 0.1 * jax.random.normal(kb, (c, 1), jnp.float32)
        mean = 0.1 * jax.random.normal(km, (c, 1), jnp.float32)
        var = jax.random.uniform(kv, (c, 1), jnp.float32, 0.5, 1.5)
        return gamma, beta, mean, var

    def fold(W, b, gamma, beta, mean, var, eps=1e-5):
        scale = gamma / jnp.sqrt(var + eps)          # (cout, 1)
        return W * scale, (b - mean) * scale + beta

    W1 = conv_w(ks[0], cin1, h1)     # (h1, cc+cp)
    b1 = conv_b(ks[1], cin1, h1)     # (h1, 1)
    W1, b1 = fold(W1, b1, *bn(ks[2], h1))
    W2 = conv_w(ks[3], h1, h2)       # (h2, h1)
    b2 = conv_b(ks[4], h1, h2)       # (h2, 1)
    W2, b2 = fold(W2, b2, *bn(ks[5], h2))
    w1a, w1b = W1[:, :cc], W1[:, cc:]   # split concat([interp, pf]) channels
    return w1a, w1b, b1, W2, b2


if __name__ == "__main__":
    key = jax.random.PRNGKey(0)
    B, N, M = 2, 16, 8           # batch, points, centers
    Cc, Cp = 8, 4                # center-feature / extra point-feature channels
    hidden = (32, 32)            # SharedMLP out_channels list

    k1, k2, k3, k4, kp = jax.random.split(key, 5)
    points_coords = jax.random.normal(k1, (B, 3, N), jnp.float32)
    centers_coords = jax.random.normal(k2, (B, 3, M), jnp.float32)
    centers_features = jax.random.normal(k3, (B, Cc, M), jnp.float32)
    points_features = jax.random.normal(k4, (B, Cp, N), jnp.float32)

    params = init_params(kp, Cc, Cp, hidden)

    mlp_out, out_coords = pointnet_fp_module(
        points_coords, centers_coords, centers_features, points_features, params)
    jax.block_until_ready((mlp_out, out_coords))

    assert mlp_out.shape == (B, hidden[-1], N)
    assert out_coords.shape == (B, 3, N)
    assert bool(jnp.all(jnp.isfinite(mlp_out)))
    print("KERNEL_OK")
</pallas_src>

<mosaic_0001>
module attributes {stable_mosaic.version = 11 : i64} {
  func.func @kernel(%arg0: i32, %arg1: i32, %arg2: memref<1x3x128xf32, #tpu.memory_space<vmem>>, %arg3: memref<1x8x3xf32, #tpu.memory_space<vmem>>, %arg4: memref<1x8x8xbf16, #tpu.memory_space<vmem>>, %arg5: memref<1x4x128xbf16, #tpu.memory_space<vmem>>, %arg6: memref<32x8xbf16, #tpu.memory_space<vmem>>, %arg7: memref<32x4xbf16, #tpu.memory_space<vmem>>, %arg8: memref<32x1xf32, #tpu.memory_space<vmem>>, %arg9: memref<32x32xbf16, #tpu.memory_space<vmem>>, %arg10: memref<32x1xf32, #tpu.memory_space<vmem>>, %arg11: memref<1x32x128xf32, #tpu.memory_space<vmem>>) attributes {dimension_semantics = [#tpu.dimension_semantics<parallel>, #tpu.dimension_semantics<parallel>], iteration_bounds = array<i64: 2, 1>, scalar_prefetch = 0 : i64, scratch_operands = 0 : i64, tpu.core_type = #tpu.core_type<tc>, window_params = [{transform_indices = @transform_0, window_bounds = array<i64: 1, 3, 128>}, {pipeline_mode = #tpu.pipeline_mode<synchronous>, transform_indices = @transform_1, window_bounds = array<i64: 1, 8, 3>}, {pipeline_mode = #tpu.pipeline_mode<synchronous>, transform_indices = @transform_2, window_bounds = array<i64: 1, 8, 8>}, {transform_indices = @transform_3, window_bounds = array<i64: 1, 4, 128>}, {pipeline_mode = #tpu.pipeline_mode<synchronous>, transform_indices = @transform_4, window_bounds = array<i64: 32, 8>}, {pipeline_mode = #tpu.pipeline_mode<synchronous>, transform_indices = @transform_5, window_bounds = array<i64: 32, 4>}, {pipeline_mode = #tpu.pipeline_mode<synchronous>, transform_indices = @transform_6, window_bounds = array<i64: 32, 1>}, {pipeline_mode = #tpu.pipeline_mode<synchronous>, transform_indices = @transform_7, window_bounds = array<i64: 32, 32>}, {pipeline_mode = #tpu.pipeline_mode<synchronous>, transform_indices = @transform_8, window_bounds = array<i64: 32, 1>}, {transform_indices = @transform_9, window_bounds = array<i64: 1, 32, 128>}]} {
    %c0 = arith.constant 0 : index
    %c0_0 = arith.constant 0 : index
    %c0_1 = arith.constant 0 : index
    %0 = vector.load %arg2[%c0, %c0_0, %c0_1] : memref<1x3x128xf32, #tpu.memory_space<vmem>>, vector<1x3x128xf32>
    %1 = vector.shape_cast %0 : vector<1x3x128xf32> to vector<3x128xf32>
    %c0_2 = arith.constant 0 : index
    %c0_3 = arith.constant 0 : index
    %c0_4 = arith.constant 0 : index
    %2 = vector.load %arg3[%c0_2, %c0_3, %c0_4] : memref<1x8x3xf32, #tpu.memory_space<vmem>>, vector<1x8x3xf32>
    %3 = vector.shape_cast %2 : vector<1x8x3xf32> to vector<8x3xf32>
    %c0_5 = arith.constant 0 : index
    %c0_6 = arith.constant 0 : index
    %c0_7 = arith.constant 0 : index
    %4 = vector.load %arg4[%c0_5, %c0_6, %c0_7] : memref<1x8x8xbf16, #tpu.memory_space<vmem>>, vector<1x8x8xbf16>
    %5 = vector.shape_cast %4 : vector<1x8x8xbf16> to vector<8x8xbf16>
    %6 = vector.extract_strided_slice %3 {offsets = [0, 0], sizes = [8, 1], strides = [1, 1]} : vector<8x3xf32> to vector<8x1xf32>
    %7 = vector.extract_strided_slice %1 {offsets = [0, 0], sizes = [1, 128], strides = [1, 1]} : vector<3x128xf32> to vector<1x128xf32>
    %8 = vector.broadcast %6 : vector<8x1xf32> to vector<8x128xf32>
    %9 = vector.broadcast %7 : vector<1x128xf32> to vector<8x128xf32>
    %10 = arith.subf %8, %9 : vector<8x128xf32>
    %11 = arith.mulf %10, %10 : vector<8x128xf32>
    %12 = vector.extract_strided_slice %3 {offsets = [0, 1], sizes = [8, 1], strides = [1, 1]} : vector<8x3xf32> to vector<8x1xf32>
    %13 = vector.extract_strided_slice %1 {offsets = [1, 0], sizes = [1, 128], strides = [1, 1]} : vector<3x128xf32> to vector<1x128xf32>
    %14 = vector.broadcast %12 : vector<8x1xf32> to vector<8x128xf32>
    %15 = vector.broadcast %13 : vector<1x128xf32> to vector<8x128xf32>
    %16 = arith.subf %14, %15 : vector<8x128xf32>
    %17 = arith.mulf %16, %16 : vector<8x128xf32>
    %18 = arith.addf %11, %17 : vector<8x128xf32>
    %19 = vector.extract_strided_slice %3 {offsets = [0, 2], sizes = [8, 1], strides = [1, 1]} : vector<8x3xf32> to vector<8x1xf32>
    %20 = vector.extract_strided_slice %1 {offsets = [2, 0], sizes = [1, 128], strides = [1, 1]} : vector<3x128xf32> to vector<1x128xf32>
    %21 = vector.broadcast %19 : vector<8x1xf32> to vector<8x128xf32>
    %22 = vector.broadcast %20 : vector<1x128xf32> to vector<8x128xf32>
    %23 = arith.subf %21, %22 : vector<8x128xf32>
    %24 = arith.mulf %23, %23 : vector<8x128xf32>
    %25 = arith.addf %18, %24 : vector<8x128xf32>
    %26 = tpu.iota {dimensions = array<i32: 0>} : vector<8x1xi32>
    %27 = tpu.bitcast %25 : vector<8x128xf32> -> vector<8x128xi32>
    %c-8_i32 = arith.constant -8 : i32
    %28 = vector.broadcast %c-8_i32 : i32 to vector<8x128xi32>
    %29 = arith.andi %27, %28 : vector<8x128xi32>
    %30 = vector.broadcast %26 : vector<8x1xi32> to vector<8x128xi32>
    %31 = arith.ori %29, %30 : vector<8x128xi32>
    %cst = arith.constant 0.000000e+00 : f32
    %32 = vector.broadcast %cst : f32 to vector<8x128xf32>
    %cst_8 = arith.constant 0.000000e+00 : f32
    %33 = vector.broadcast %cst_8 : f32 to vector<1x128xf32>
    %cst_9 = arith.constant dense<2147483647> : vector<128xi32>
    %34 = vector.multi_reduction <minsi>, %31, %cst_9 [0] : vector<8x128xi32> to vector<128xi32>
    %35 = vector.shape_cast %34 : vector<128xi32> to vector<1x128xi32>
    %c-8_i32_10 = arith.constant -8 : i32
    %36 = vector.broadcast %c-8_i32_10 : i32 to vector<1x128xi32>
    %37 = arith.andi %35, %36 : vector<1x128xi32>
    %38 = tpu.bitcast %37 : vector<1x128xi32> -> vector<1x128xf32>
    %39 = vector.broadcast %35 : vector<1x128xi32> to vector<8x128xi32>
    %40 = arith.cmpi eq, %31, %39 : vector<8x128xi32>
    %cst_11 = arith.constant 9.99999993E-9 : f32
    %41 = vector.broadcast %cst_11 : f32 to vector<1x128xf32>
    %42 = arith.addf %38, %41 : vector<1x128xf32>
    %cst_12 = arith.constant 1.000000e+00 : f32
    %43 = vector.broadcast %cst_12 : f32 to vector<1x128xf32>
    %44 = arith.divf %43, %42 : vector<1x128xf32>
    %cst_13 = arith.constant 0.000000e+00 : f32
    %45 = vector.shape_cast %44 : vector<1x128xf32> to vector<1x128xf32>
    %46 = vector.broadcast %45 : vector<1x128xf32> to vector<8x128xf32>
    %47 = vector.broadcast %cst_13 : f32 to vector<8x128xf32>
    %48 = arith.select %40, %46, %47 : vector<8x128xi1>, vector<8x128xf32>
    %49 = arith.addf %32, %48 : vector<8x128xf32>
    %50 = arith.addf %33, %44 : vector<1x128xf32>
    %c2147483647_i32 = arith.constant 2147483647 : i32
    %51 = vector.broadcast %c2147483647_i32 : i32 to vector<8x128xi32>
    %52 = arith.select %40, %51, %31 : vector<8x128xi1>, vector<8x128xi32>
    %cst_14 = arith.constant dense<2147483647> : vector<128xi32>
    %53 = vector.multi_reduction <minsi>, %52, %cst_14 [0] : vector<8x128xi32> to vector<128xi32>
    %54 = vector.shape_cast %53 : vector<128xi32> to vector<1x128xi32>
    %c-8_i32_15 = arith.constant -8 : i32
    %55 = vector.broadcast %c-8_i32_15 : i32 to vector<1x128xi32>
    %56 = arith.andi %54, %55 : vector<1x128xi32>
    %57 = tpu.bitcast %56 : vector<1x128xi32> -> vector<1x128xf32>
    %58 = vector.broadcast %54 : vector<1x128xi32> to vector<8x128xi32>
    %59 = arith.cmpi eq, %52, %58 : vector<8x128xi32>
    %cst_16 = arith.constant 9.99999993E-9 : f32
    %60 = vector.broadcast %cst_16 : f32 to vector<1x128xf32>
    %61 = arith.addf %57, %60 : vector<1x128xf32>
    %cst_17 = arith.constant 1.000000e+00 : f32
    %62 = vector.broadcast %cst_17 : f32 to vector<1x128xf32>
    %63 = arith.divf %62, %61 : vector<1x128xf32>
    %cst_18 = arith.constant 0.000000e+00 : f32
    %64 = vector.shape_cast %63 : vector<1x128xf32> to vector<1x128xf32>
    %65 = vector.broadcast %64 : vector<1x128xf32> to vector<8x128xf32>
    %66 = vector.broadcast %cst_18 : f32 to vector<8x128xf32>
    %67 = arith.select %59, %65, %66 : vector<8x128xi1>, vector<8x128xf32>
    %68 = arith.addf %49, %67 : vector<8x128xf32>
    %69 = arith.addf %50, %63 : vector<1x128xf32>
    %c2147483647_i32_19 = arith.constant 2147483647 : i32
    %70 = vector.broadcast %c2147483647_i32_19 : i32 to vector<8x128xi32>
    %71 = arith.select %59, %70, %52 : vector<8x128xi1>, vector<8x128xi32>
    %cst_20 = arith.constant dense<2147483647> : vector<128xi32>
    %72 = vector.multi_reduction <minsi>, %71, %cst_20 [0] : vector<8x128xi32> to vector<128xi32>
    %73 = vector.shape_cast %72 : vector<128xi32> to vector<1x128xi32>
    %c-8_i32_21 = arith.constant -8 : i32
    %74 = vector.broadcast %c-8_i32_21 : i32 to vector<1x128xi32>
    %75 = arith.andi %73, %74 : vector<1x128xi32>
    %76 = tpu.bitcast %75 : vector<1x128xi32> -> vector<1x128xf32>
    %77 = vector.broadcast %73 : vector<1x128xi32> to vector<8x128xi32>
    %78 = arith.cmpi eq, %71, %77 : vector<8x128xi32>
    %cst_22 = arith.constant 9.99999993E-9 : f32
    %79 = vector.broadcast %cst_22 : f32 to vector<1x128xf32>
    %80 = arith.addf %76, %79 : vector<1x128xf32>
    %cst_23 = arith.constant 1.000000e+00 : f32
    %81 = vector.broadcast %cst_23 : f32 to vector<1x128xf32>
    %82 = arith.divf %81, %80 : vector<1x128xf32>
    %cst_24 = arith.constant 0.000000e+00 : f32
    %83 = vector.shape_cast %82 : vector<1x128xf32> to vector<1x128xf32>
    %84 = vector.broadcast %83 : vector<1x128xf32> to vector<8x128xf32>
    %85 = vector.broadcast %cst_24 : f32 to vector<8x128xf32>
    %86 = arith.select %78, %84, %85 : vector<8x128xi1>, vector<8x128xf32>
    %87 = arith.addf %68, %86 : vector<8x128xf32>
    %88 = arith.addf %69, %82 : vector<1x128xf32>
    %cst_25 = arith.constant 1.000000e+00 : f32
    %89 = vector.broadcast %cst_25 : f32 to vector<1x128xf32>
    %90 = arith.divf %89, %88 : vector<1x128xf32>
    %91 = vector.broadcast %90 : vector<1x128xf32> to vector<8x128xf32>
    %92 = arith.mulf %87, %91 : vector<8x128xf32>
    %93 = arith.truncf %92 : vector<8x128xf32> to vector<8x128xbf16>
    %cst_26 = arith.constant dense<0.000000e+00> : vector<8x128xf32>
    %94 = tpu.matmul %5, %93, %cst_26 {dimension_numbers = #tpu.dot_dimension_numbers<[1], [0], [0], [1], [0, 0, 1, 1], [], []>} : vector<8x8xbf16>, vector<8x128xbf16>, vector<8x128xf32> -> vector<8x128xf32>
    %c0_27 = arith.constant 0 : index
    %c0_28 = arith.constant 0 : index
    %95 = vector.load %arg6[%c0_27, %c0_28] : memref<32x8xbf16, #tpu.memory_space<vmem>>, vector<32x8xbf16>
    %96 = arith.truncf %94 : vector<8x128xf32> to vector<8x128xbf16>
    %cst_29 = arith.constant dense<0.000000e+00> : vector<32x128xf32>
    %97 = tpu.matmul %95, %96, %cst_29 {dimension_numbers = #tpu.dot_dimension_numbers<[1], [0], [0], [1], [0, 0, 1, 1], [], []>} : vector<32x8xbf16>, vector<8x128xbf16>, vector<32x128xf32> -> vector<32x128xf32>
    %c0_30 = arith.constant 0 : index
    %c0_31 = arith.constant 0 : index
    %98 = vector.load %arg7[%c0_30, %c0_31] : memref<32x4xbf16, #tpu.memory_space<vmem>>, vector<32x4xbf16>
    %c0_32 = arith.constant 0 : index
    %c0_33 = arith.constant 0 : index
    %c0_34 = arith.constant 0 : index
    %99 = vector.load %arg5[%c0_32, %c0_33, %c0_34] : memref<1x4x128xbf16, #tpu.memory_space<vmem>>, vector<1x4x128xbf16>
    %100 = vector.shape_cast %99 : vector<1x4x128xbf16> to vector<4x128xbf16>
    %cst_35 = arith.constant dense<0.000000e+00> : vector<32x128xf32>
    %101 = tpu.matmul %98, %100, %cst_35 {dimension_numbers = #tpu.dot_dimension_numbers<[1], [0], [0], [1], [0, 0, 1, 1], [], []>} : vector<32x4xbf16>, vector<4x128xbf16>, vector<32x128xf32> -> vector<32x128xf32>
    %102 = arith.addf %97, %101 : vector<32x128xf32>
    %c0_36 = arith.constant 0 : index
    %c0_37 = arith.constant 0 : index
    %103 = vector.load %arg8[%c0_36, %c0_37] : memref<32x1xf32, #tpu.memory_space<vmem>>, vector<32x1xf32>
    %104 = vector.broadcast %103 : vector<32x1xf32> to vector<32x128xf32>
    %105 = arith.addf %102, %104 : vector<32x128xf32>
    %cst_38 = arith.constant 0.000000e+00 : f32
    %106 = vector.broadcast %cst_38 : f32 to vector<32x128xf32>
    %107 = arith.maximumf %105, %106 : vector<32x128xf32>
    %c0_39 = arith.constant 0 : index
    %c0_40 = arith.constant 0 : index
    %108 = vector.load %arg9[%c0_39, %c0_40] : memref<32x32xbf16, #tpu.memory_space<vmem>>, vector<32x32xbf16>
    %109 = arith.truncf %107 : vector<32x128xf32> to vector<32x128xbf16>
    %cst_41 = arith.constant dense<0.000000e+00> : vector<32x128xf32>
    %110 = tpu.matmul %108, %109, %cst_41 {dimension_numbers = #tpu.dot_dimension_numbers<[1], [0], [0], [1], [0, 0, 1, 1], [], []>} : vector<32x32xbf16>, vector<32x128xbf16>, vector<32x128xf32> -> vector<32x128xf32>
    %c0_42 = arith.constant 0 : index
    %c0_43 = arith.constant 0 : index
    %111 = vector.load %arg10[%c0_42, %c0_43] : memref<32x1xf32, #tpu.memory_space<vmem>>, vector<32x1xf32>
    %112 = vector.broadcast %111 : vector<32x1xf32> to vector<32x128xf32>
    %113 = arith.addf %110, %112 : vector<32x128xf32>
    %cst_44 = arith.constant 0.000000e+00 : f32
    %114 = vector.broadcast %cst_44 : f32 to vector<32x128xf32>
    %115 = arith.maximumf %113, %114 : vector<32x128xf32>
    %c0_45 = arith.constant 0 : index
    %c0_46 = arith.constant 0 : index
    %c0_47 = arith.constant 0 : index
    %116 = vector.load %arg11[%c0_45, %c0_46, %c0_47] : memref<1x32x128xf32, #tpu.memory_space<vmem>>, vector<1x32x128xf32>
    %117 = vector.shape_cast %116 : vector<1x32x128xf32> to vector<32x128xf32>
    %118 = vector.shape_cast %115 : vector<32x128xf32> to vector<1x32x128xf32>
    tpu.vector_store %arg11[%c0_45, %c0_46, %c0_47], %118 {strides = array<i32>} : memref<1x32x128xf32, #tpu.memory_space<vmem>>, vector<1x32x128xf32>,
    return
  }
  func.func @transform_0(%arg0: i32, %arg1: i32) -> (i32, i32, i32) {
    %c0_i32 = arith.constant 0 : i32
    %c0_i32_0 = arith.constant 0 : i32
    return %arg0, %c0_i32, %arg1 : i32, i32, i32
  }
  func.func @transform_1(%arg0: i32, %arg1: i32) -> (i32, i32, i32) {
    %c0_i32 = arith.constant 0 : i32
    %c0_i32_0 = arith.constant 0 : i32
    %c0_i32_1 = arith.constant 0 : i32
    return %arg0, %c0_i32, %c0_i32_0 : i32, i32, i32
  }
  func.func @transform_2(%arg0: i32, %arg1: i32) -> (i32, i32, i32) {
    %c0_i32 = arith.constant 0 : i32
    %c0_i32_0 = arith.constant 0 : i32
    %c0_i32_1 = arith.constant 0 : i32
    return %arg0, %c0_i32, %c0_i32_0 : i32, i32, i32
  }
  func.func @transform_3(%arg0: i32, %arg1: i32) -> (i32, i32, i32) {
    %c0_i32 = arith.constant 0 : i32
    %c0_i32_0 = arith.constant 0 : i32
    return %arg0, %c0_i32, %arg1 : i32, i32, i32
  }
  func.func @transform_4(%arg0: i32, %arg1: i32) -> (i32, i32) {
    %c0_i32 = arith.constant 0 : i32
    %c0_i32_0 = arith.constant 0 : i32
    %c0_i32_1 = arith.constant 0 : i32
    return %c0_i32, %c0_i32_0 : i32, i32
  }
  func.func @transform_5(%arg0: i32, %arg1: i32) -> (i32, i32) {
    %c0_i32 = arith.constant 0 : i32
    %c0_i32_0 = arith.constant 0 : i32
    %c0_i32_1 = arith.constant 0 : i32
    return %c0_i32, %c0_i32_0 : i32, i32
  }
  func.func @transform_6(%arg0: i32, %arg1: i32) -> (i32, i32) {
    %c0_i32 = arith.constant 0 : i32
    %c0_i32_0 = arith.constant 0 : i32
    %c0_i32_1 = arith.constant 0 : i32
    return %c0_i32, %c0_i32_0 : i32, i32
  }
  func.func @transform_7(%arg0: i32, %arg1: i32) -> (i32, i32) {
    %c0_i32 = arith.constant 0 : i32
    %c0_i32_0 = arith.constant 0 : i32
    %c0_i32_1 = arith.constant 0 : i32
    return %c0_i32, %c0_i32_0 : i32, i32
  }
  func.func @transform_8(%arg0: i32, %arg1: i32) -> (i32, i32) {
    %c0_i32 = arith.constant 0 : i32
    %c0_i32_0 = arith.constant 0 : i32
    %c0_i32_1 = arith.constant 0 : i32
    return %c0_i32, %c0_i32_0 : i32, i32
  }
  func.func @transform_9(%arg0: i32, %arg1: i32) -> (i32, i32, i32) {
    %c0_i32 = arith.constant 0 : i32
    %c0_i32_0 = arith.constant 0 : i32
    return %arg0, %c0_i32, %arg1 : i32, i32, i32
  }
}

module attributes {stable_mosaic.version = 11 : i64} {
  func.func @kernel(%arg0: i32, %arg1: i32, %arg2: memref<1x3x128xf32, #tpu.memory_space<vmem>>, %arg3: memref<1x8x3xf32, #tpu.memory_space<vmem>>, %arg4: memref<1x8x8xbf16, #tpu.memory_space<vmem>>, %arg5: memref<1x4x128xbf16, #tpu.memory_space<vmem>>, %arg6: memref<32x8xbf16, #tpu.memory_space<vmem>>, %arg7: memref<32x4xbf16, #tpu.memory_space<vmem>>, %arg8: memref<32x1xf32, #tpu.memory_space<vmem>>, %arg9: memref<32x32xbf16, #tpu.memory_space<vmem>>, %arg10: memref<32x1xf32, #tpu.memory_space<vmem>>, %arg11: memref<1x32x128xf32, #tpu.memory_space<vmem>>) attributes {dimension_semantics = [#tpu.dimension_semantics<parallel>, #tpu.dimension_semantics<parallel>], iteration_bounds = array<i64: 2, 1>, scalar_prefetch = 0 : i64, scratch_operands = 0 : i64, tpu.core_type = #tpu.core_type<tc>, window_params = [{transform_indices = @transform_0, window_bounds = array<i64: 1, 3, 128>}, {transform_indices = @transform_1, window_bounds = array<i64: 1, 8, 3>}, {transform_indices = @transform_2, window_bounds = array<i64: 1, 8, 8>}, {transform_indices = @transform_3, window_bounds = array<i64: 1, 4, 128>}, {pipeline_mode = #tpu.pipeline_mode<synchronous>, transform_indices = @transform_4, window_bounds = array<i64: 32, 8>}, {pipeline_mode = #tpu.pipeline_mode<synchronous>, transform_indices = @transform_5, window_bounds = array<i64: 32, 4>}, {pipeline_mode = #tpu.pipeline_mode<synchronous>, transform_indices = @transform_6, window_bounds = array<i64: 32, 1>}, {pipeline_mode = #tpu.pipeline_mode<synchronous>, transform_indices = @transform_7, window_bounds = array<i64: 32, 32>}, {pipeline_mode = #tpu.pipeline_mode<synchronous>, transform_indices = @transform_8, window_bounds = array<i64: 32, 1>}, {transform_indices = @transform_9, window_bounds = array<i64: 1, 32, 128>}]} {
    %c0 = arith.constant 0 : index
    %c0_0 = arith.constant 0 : index
    %c0_1 = arith.constant 0 : index
    %0 = vector.load %arg2[%c0, %c0_0, %c0_1] : memref<1x3x128xf32, #tpu.memory_space<vmem>>, vector<1x3x128xf32>
    %1 = vector.shape_cast %0 : vector<1x3x128xf32> to vector<3x128xf32>
    %c0_2 = arith.constant 0 : index
    %c0_3 = arith.constant 0 : index
    %c0_4 = arith.constant 0 : index
    %2 = vector.load %arg3[%c0_2, %c0_3, %c0_4] : memref<1x8x3xf32, #tpu.memory_space<vmem>>, vector<1x8x3xf32>
    %3 = vector.shape_cast %2 : vector<1x8x3xf32> to vector<8x3xf32>
    %c0_5 = arith.constant 0 : index
    %c0_6 = arith.constant 0 : index
    %c0_7 = arith.constant 0 : index
    %4 = vector.load %arg4[%c0_5, %c0_6, %c0_7] : memref<1x8x8xbf16, #tpu.memory_space<vmem>>, vector<1x8x8xbf16>
    %5 = vector.shape_cast %4 : vector<1x8x8xbf16> to vector<8x8xbf16>
    %6 = vector.extract_strided_slice %3 {offsets = [0, 0], sizes = [8, 1], strides = [1, 1]} : vector<8x3xf32> to vector<8x1xf32>
    %7 = vector.extract_strided_slice %1 {offsets = [0, 0], sizes = [1, 128], strides = [1, 1]} : vector<3x128xf32> to vector<1x128xf32>
    %8 = vector.broadcast %6 : vector<8x1xf32> to vector<8x128xf32>
    %9 = vector.broadcast %7 : vector<1x128xf32> to vector<8x128xf32>
    %10 = arith.subf %8, %9 : vector<8x128xf32>
    %11 = arith.mulf %10, %10 : vector<8x128xf32>
    %12 = vector.extract_strided_slice %3 {offsets = [0, 1], sizes = [8, 1], strides = [1, 1]} : vector<8x3xf32> to vector<8x1xf32>
    %13 = vector.extract_strided_slice %1 {offsets = [1, 0], sizes = [1, 128], strides = [1, 1]} : vector<3x128xf32> to vector<1x128xf32>
    %14 = vector.broadcast %12 : vector<8x1xf32> to vector<8x128xf32>
    %15 = vector.broadcast %13 : vector<1x128xf32> to vector<8x128xf32>
    %16 = arith.subf %14, %15 : vector<8x128xf32>
    %17 = arith.mulf %16, %16 : vector<8x128xf32>
    %18 = arith.addf %11, %17 : vector<8x128xf32>
    %19 = vector.extract_strided_slice %3 {offsets = [0, 2], sizes = [8, 1], strides = [1, 1]} : vector<8x3xf32> to vector<8x1xf32>
    %20 = vector.extract_strided_slice %1 {offsets = [2, 0], sizes = [1, 128], strides = [1, 1]} : vector<3x128xf32> to vector<1x128xf32>
    %21 = vector.broadcast %19 : vector<8x1xf32> to vector<8x128xf32>
    %22 = vector.broadcast %20 : vector<1x128xf32> to vector<8x128xf32>
    %23 = arith.subf %21, %22 : vector<8x128xf32>
    %24 = arith.mulf %23, %23 : vector<8x128xf32>
    %25 = arith.addf %18, %24 : vector<8x128xf32>
    %26 = tpu.iota {dimensions = array<i32: 0>} : vector<8x1xi32>
    %27 = tpu.bitcast %25 : vector<8x128xf32> -> vector<8x128xi32>
    %c-8_i32 = arith.constant -8 : i32
    %28 = vector.broadcast %c-8_i32 : i32 to vector<8x128xi32>
    %29 = arith.andi %27, %28 : vector<8x128xi32>
    %30 = vector.broadcast %26 : vector<8x1xi32> to vector<8x128xi32>
    %31 = arith.ori %29, %30 : vector<8x128xi32>
    %cst = arith.constant 0.000000e+00 : f32
    %32 = vector.broadcast %cst : f32 to vector<8x128xf32>
    %cst_8 = arith.constant 0.000000e+00 : f32
    %33 = vector.broadcast %cst_8 : f32 to vector<1x128xf32>
    %cst_9 = arith.constant dense<2147483647> : vector<128xi32>
    %34 = vector.multi_reduction <minsi>, %31, %cst_9 [0] : vector<8x128xi32> to vector<128xi32>
    %35 = vector.shape_cast %34 : vector<128xi32> to vector<1x128xi32>
    %c-8_i32_10 = arith.constant -8 : i32
    %36 = vector.broadcast %c-8_i32_10 : i32 to vector<1x128xi32>
    %37 = arith.andi %35, %36 : vector<1x128xi32>
    %38 = tpu.bitcast %37 : vector<1x128xi32> -> vector<1x128xf32>
    %39 = vector.broadcast %35 : vector<1x128xi32> to vector<8x128xi32>
    %40 = arith.cmpi eq, %31, %39 : vector<8x128xi32>
    %cst_11 = arith.constant 9.99999993E-9 : f32
    %41 = vector.broadcast %cst_11 : f32 to vector<1x128xf32>
    %42 = arith.addf %38, %41 : vector<1x128xf32>
    %cst_12 = arith.constant 1.000000e+00 : f32
    %43 = vector.broadcast %cst_12 : f32 to vector<1x128xf32>
    %44 = arith.divf %43, %42 : vector<1x128xf32>
    %cst_13 = arith.constant 0.000000e+00 : f32
    %45 = vector.shape_cast %44 : vector<1x128xf32> to vector<1x128xf32>
    %46 = vector.broadcast %45 : vector<1x128xf32> to vector<8x128xf32>
    %47 = vector.broadcast %cst_13 : f32 to vector<8x128xf32>
    %48 = arith.select %40, %46, %47 : vector<8x128xi1>, vector<8x128xf32>
    %49 = arith.addf %32, %48 : vector<8x128xf32>
    %50 = arith.addf %33, %44 : vector<1x128xf32>
    %c2147483647_i32 = arith.constant 2147483647 : i32
    %51 = vector.broadcast %c2147483647_i32 : i32 to vector<8x128xi32>
    %52 = arith.select %40, %51, %31 : vector<8x128xi1>, vector<8x128xi32>
    %cst_14 = arith.constant dense<2147483647> : vector<128xi32>
    %53 = vector.multi_reduction <minsi>, %52, %cst_14 [0] : vector<8x128xi32> to vector<128xi32>
    %54 = vector.shape_cast %53 : vector<128xi32> to vector<1x128xi32>
    %c-8_i32_15 = arith.constant -8 : i32
    %55 = vector.broadcast %c-8_i32_15 : i32 to vector<1x128xi32>
    %56 = arith.andi %54, %55 : vector<1x128xi32>
    %57 = tpu.bitcast %56 : vector<1x128xi32> -> vector<1x128xf32>
    %58 = vector.broadcast %54 : vector<1x128xi32> to vector<8x128xi32>
    %59 = arith.cmpi eq, %52, %58 : vector<8x128xi32>
    %cst_16 = arith.constant 9.99999993E-9 : f32
    %60 = vector.broadcast %cst_16 : f32 to vector<1x128xf32>
    %61 = arith.addf %57, %60 : vector<1x128xf32>
    %cst_17 = arith.constant 1.000000e+00 : f32
    %62 = vector.broadcast %cst_17 : f32 to vector<1x128xf32>
    %63 = arith.divf %62, %61 : vector<1x128xf32>
    %cst_18 = arith.constant 0.000000e+00 : f32
    %64 = vector.shape_cast %63 : vector<1x128xf32> to vector<1x128xf32>
    %65 = vector.broadcast %64 : vector<1x128xf32> to vector<8x128xf32>
    %66 = vector.broadcast %cst_18 : f32 to vector<8x128xf32>
    %67 = arith.select %59, %65, %66 : vector<8x128xi1>, vector<8x128xf32>
    %68 = arith.addf %49, %67 : vector<8x128xf32>
    %69 = arith.addf %50, %63 : vector<1x128xf32>
    %c2147483647_i32_19 = arith.constant 2147483647 : i32
    %70 = vector.broadcast %c2147483647_i32_19 : i32 to vector<8x128xi32>
    %71 = arith.select %59, %70, %52 : vector<8x128xi1>, vector<8x128xi32>
    %cst_20 = arith.constant dense<2147483647> : vector<128xi32>
    %72 = vector.multi_reduction <minsi>, %71, %cst_20 [0] : vector<8x128xi32> to vector<128xi32>
    %73 = vector.shape_cast %72 : vector<128xi32> to vector<1x128xi32>
    %c-8_i32_21 = arith.constant -8 : i32
    %74 = vector.broadcast %c-8_i32_21 : i32 to vector<1x128xi32>
    %75 = arith.andi %73, %74 : vector<1x128xi32>
    %76 = tpu.bitcast %75 : vector<1x128xi32> -> vector<1x128xf32>
    %77 = vector.broadcast %73 : vector<1x128xi32> to vector<8x128xi32>
    %78 = arith.cmpi eq, %71, %77 : vector<8x128xi32>
    %cst_22 = arith.constant 9.99999993E-9 : f32
    %79 = vector.broadcast %cst_22 : f32 to vector<1x128xf32>
    %80 = arith.addf %76, %79 : vector<1x128xf32>
    %cst_23 = arith.constant 1.000000e+00 : f32
    %81 = vector.broadcast %cst_23 : f32 to vector<1x128xf32>
    %82 = arith.divf %81, %80 : vector<1x128xf32>
    %cst_24 = arith.constant 0.000000e+00 : f32
    %83 = vector.shape_cast %82 : vector<1x128xf32> to vector<1x128xf32>
    %84 = vector.broadcast %83 : vector<1x128xf32> to vector<8x128xf32>
    %85 = vector.broadcast %cst_24 : f32 to vector<8x128xf32>
    %86 = arith.select %78, %84, %85 : vector<8x128xi1>, vector<8x128xf32>
    %87 = arith.addf %68, %86 : vector<8x128xf32>
    %88 = arith.addf %69, %82 : vector<1x128xf32>
    %cst_25 = arith.constant 1.000000e+00 : f32
    %89 = vector.broadcast %cst_25 : f32 to vector<1x128xf32>
    %90 = arith.divf %89, %88 : vector<1x128xf32>
    %91 = vector.broadcast %90 : vector<1x128xf32> to vector<8x128xf32>
    %92 = arith.mulf %87, %91 : vector<8x128xf32>
    %93 = arith.truncf %92 : vector<8x128xf32> to vector<8x128xbf16>
    %cst_26 = arith.constant dense<0.000000e+00> : vector<8x128xf32>
    %94 = tpu.matmul %5, %93, %cst_26 {dimension_numbers = #tpu.dot_dimension_numbers<[1], [0], [0], [1], [0, 0, 1, 1], [], []>} : vector<8x8xbf16>, vector<8x128xbf16>, vector<8x128xf32> -> vector<8x128xf32>
    %c0_27 = arith.constant 0 : index
    %c0_28 = arith.constant 0 : index
    %95 = vector.load %arg6[%c0_27, %c0_28] : memref<32x8xbf16, #tpu.memory_space<vmem>>, vector<32x8xbf16>
    %96 = arith.truncf %94 : vector<8x128xf32> to vector<8x128xbf16>
    %cst_29 = arith.constant dense<0.000000e+00> : vector<32x128xf32>
    %97 = tpu.matmul %95, %96, %cst_29 {dimension_numbers = #tpu.dot_dimension_numbers<[1], [0], [0], [1], [0, 0, 1, 1], [], []>} : vector<32x8xbf16>, vector<8x128xbf16>, vector<32x128xf32> -> vector<32x128xf32>
    %c0_30 = arith.constant 0 : index
    %c0_31 = arith.constant 0 : index
    %98 = vector.load %arg7[%c0_30, %c0_31] : memref<32x4xbf16, #tpu.memory_space<vmem>>, vector<32x4xbf16>
    %c0_32 = arith.constant 0 : index
    %c0_33 = arith.constant 0 : index
    %c0_34 = arith.constant 0 : index
    %99 = vector.load %arg5[%c0_32, %c0_33, %c0_34] : memref<1x4x128xbf16, #tpu.memory_space<vmem>>, vector<1x4x128xbf16>
    %100 = vector.shape_cast %99 : vector<1x4x128xbf16> to vector<4x128xbf16>
    %cst_35 = arith.constant dense<0.000000e+00> : vector<32x128xf32>
    %101 = tpu.matmul %98, %100, %cst_35 {dimension_numbers = #tpu.dot_dimension_numbers<[1], [0], [0], [1], [0, 0, 1, 1], [], []>} : vector<32x4xbf16>, vector<4x128xbf16>, vector<32x128xf32> -> vector<32x128xf32>
    %102 = arith.addf %97, %101 : vector<32x128xf32>
    %c0_36 = arith.constant 0 : index
    %c0_37 = arith.constant 0 : index
    %103 = vector.load %arg8[%c0_36, %c0_37] : memref<32x1xf32, #tpu.memory_space<vmem>>, vector<32x1xf32>
    %104 = vector.broadcast %103 : vector<32x1xf32> to vector<32x128xf32>
    %105 = arith.addf %102, %104 : vector<32x128xf32>
    %cst_38 = arith.constant 0.000000e+00 : f32
    %106 = vector.broadcast %cst_38 : f32 to vector<32x128xf32>
    %107 = arith.maximumf %105, %106 : vector<32x128xf32>
    %c0_39 = arith.constant 0 : index
    %c0_40 = arith.constant 0 : index
    %108 = vector.load %arg9[%c0_39, %c0_40] : memref<32x32xbf16, #tpu.memory_space<vmem>>, vector<32x32xbf16>
    %109 = arith.truncf %107 : vector<32x128xf32> to vector<32x128xbf16>
    %cst_41 = arith.constant dense<0.000000e+00> : vector<32x128xf32>
    %110 = tpu.matmul %108, %109, %cst_41 {dimension_numbers = #tpu.dot_dimension_numbers<[1], [0], [0], [1], [0, 0, 1, 1], [], []>} : vector<32x32xbf16>, vector<32x128xbf16>, vector<32x128xf32> -> vector<32x128xf32>
    %c0_42 = arith.constant 0 : index
    %c0_43 = arith.constant 0 : index
    %111 = vector.load %arg10[%c0_42, %c0_43] : memref<32x1xf32, #tpu.memory_space<vmem>>, vector<32x1xf32>
    %112 = vector.broadcast %111 : vector<32x1xf32> to vector<32x128xf32>
    %113 = arith.addf %110, %112 : vector<32x128xf32>
    %cst_44 = arith.constant 0.000000e+00 : f32
    %114 = vector.broadcast %cst_44 : f32 to vector<32x128xf32>
    %115 = arith.maximumf %113, %114 : vector<32x128xf32>
    %c0_45 = arith.constant 0 : index
    %c0_46 = arith.constant 0 : index
    %c0_47 = arith.constant 0 : index
    %116 = vector.load %arg11[%c0_45, %c0_46, %c0_47] : memref<1x32x128xf32, #tpu.memory_space<vmem>>, vector<1x32x128xf32>
    %117 = vector.shape_cast %116 : vector<1x32x128xf32> to vector<32x128xf32>
    %118 = vector.shape_cast %115 : vector<32x128xf32> to vector<1x32x128xf32>
    tpu.vector_store %arg11[%c0_45, %c0_46, %c0_47], %118 {strides = array<i32>} : memref<1x32x128xf32, #tpu.memory_space<vmem>>, vector<1x32x128xf32>,
    return
  }
  func.func @transform_0(%arg0: i32, %arg1: i32) -> (i32, i32, i32) {
    %c0_i32 = arith.constant 0 : i32
    %c0_i32_0 = arith.constant 0 : i32
    return %arg0, %c0_i32, %arg1 : i32, i32, i32
  }
  func.func @transform_1(%arg0: i32, %arg1: i32) -> (i32, i32, i32) {
    %c0_i32 = arith.constant 0 : i32
    %c0_i32_0 = arith.constant 0 : i32
    %c0_i32_1 = arith.constant 0 : i32
    return %arg0, %c0_i32, %c0_i32_0 : i32, i32, i32
  }
  func.func @transform_2(%arg0: i32, %arg1: i32) -> (i32, i32, i32) {
    %c0_i32 = arith.constant 0 : i32
    %c0_i32_0 = arith.constant 0 : i32
    %c0_i32_1 = arith.constant 0 : i32
    return %arg0, %c0_i32, %c0_i32_0 : i32, i32, i32
  }
  func.func @transform_3(%arg0: i32, %arg1: i32) -> (i32, i32, i32) {
    %c0_i32 = arith.constant 0 : i32
    %c0_i32_0 = arith.constant 0 : i32
    return %arg0, %c0_i32, %arg1 : i32, i32, i32
  }
  func.func @transform_4(%arg0: i32, %arg1: i32) -> (i32, i32) {
    %c0_i32 = arith.constant 0 : i32
    %c0_i32_0 = arith.constant 0 : i32
    %c0_i32_1 = arith.constant 0 : i32
    return %c0_i32, %c0_i32_0 : i32, i32
  }
  func.func @transform_5(%arg0: i32, %arg1: i32) -> (i32, i32) {
    %c0_i32 = arith.constant 0 : i32
    %c0_i32_0 = arith.constant 0 : i32
    %c0_i32_1 = arith.constant 0 : i32
    return %c0_i32, %c0_i32_0 : i32, i32
  }
  func.func @transform_6(%arg0: i32, %arg1: i32) -> (i32, i32) {
    %c0_i32 = arith.constant 0 : i32
    %c0_i32_0 = arith.constant 0 : i32
    %c0_i32_1 = arith.constant 0 : i32
    return %c0_i32, %c0_i32_0 : i32, i32
  }
  func.func @transform_7(%arg0: i32, %arg1: i32) -> (i32, i32) {
    %c0_i32 = arith.constant 0 : i32
    %c0_i32_0 = arith.constant 0 : i32
    %c0_i32_1 = arith.constant 0 : i32
    return %c0_i32, %c0_i32_0 : i32, i32
  }
  func.func @transform_8(%arg0: i32, %arg1: i32) -> (i32, i32) {
    %c0_i32 = arith.constant 0 : i32
    %c0_i32_0 = arith.constant 0 : i32
    %c0_i32_1 = arith.constant 0 : i32
    return %c0_i32, %c0_i32_0 : i32, i32
  }
  func.func @transform_9(%arg0: i32, %arg1: i32) -> (i32, i32, i32) {
    %c0_i32 = arith.constant 0 : i32
    %c0_i32_0 = arith.constant 0 : i32
    return %arg0, %c0_i32, %arg1 : i32, i32, i32
  }
}

</mosaic_0001>

<bundles_post_ra>
// kernel: tpu_custom_call.1
= control target key start
LH: loop header
LB: loop body
LE: loop exit
PB: predicated region body
PF: predicated region fallthrough
CT: control target
= control target key end

     0   :  { %s1384_s0 = inlined_call_operand.vmem [shape: f32[2,3,128], index: 0, kind: input, shape index: {}]   ;;  %s1385_s1 = inlined_call_operand.vmem [shape: f32[2,8,3], index: 1, kind: input, shape index: {}]   ;;  %s1386_s2 = inlined_call_operand.vmem [shape: bf16[2,8,8], index: 2, kind: input, shape index: {}]   ;;  %s1387_s3 = inlined_call_operand.vmem [shape: bf16[2,4,128], index: 3, kind: input, shape index: {}]   ;;  %s1388_s4 = inlined_call_operand.vmem [shape: bf16[32,8], index: 4, kind: input, shape index: {}]   ;;  %s1389_s5 = inlined_call_operand.vmem [shape: bf16[32,4], index: 5, kind: input, shape index: {}]   ;;  %s1390_s6 = inlined_call_operand.vmem [shape: f32[32,1], index: 6, kind: input, shape index: {}]   ;;  %s1391_s7 = inlined_call_operand.vmem [shape: bf16[32,32], index: 7, kind: input, shape index: {}]   ;;  %s1392_s8 = inlined_call_operand.vmem [shape: f32[32,1], index: 8, kind: input, shape index: {}]   ;;  %s1393_s9 = inlined_call_operand.hbm [shape: f32[2,32,128], index: 9, kind: output, shape index: {}]  }
   0x1   :  { %1394 = sst [smem:[#allocation5_spill]] %s1384_s0 }
   0x2   :  { %14 = vsyncpa [#allocation3], 0 }
   0x3   :  { %16 = vsyncpa [#allocation3 + $0x1], 0  ;;  %s1176_s30 = smov 0   ;;  %s1178_s10 = smov 0  }
   0x4   :  { %s1180_s11 = smov 0   ;;  %s1182_s12 = smov 0  }
   0x5   :  { %s1184_s13 = smov 0   ;;  %s1186_s14 = smov 0  }
   0x6 LB: > { %s912_s15 = sadd.s32 4294967295, %s1119_s14   ;;  %s913_s16 = sadd.s32 4294967294, %s1119_s14   ;;  %s1119_s14 = sphi %s1186_s14, %s22_s14   ;;  %s1115_s13 = sphi %s1184_s13, %s1404_s13   ;;  %s1111_s12 = sphi %s1182_s12, %s1403_s12   ;;  %s1107_s11 = sphi %s1180_s11, %s1402_s11   ;;  %s1103_s10 = sphi %s1178_s10, %s1401_s10   ;;  %s1099_s30 = sphi %s1176_s30, %s1400_s30  }
   0x7   : > { %s34_s17 = sadd.s32 1, %s1115_s13  ;;  %s256_s18 = sadd.s32 1, %s1107_s11 }
   0x8   : > { %p36_p0 = scmp.ge.s32.totalorder %s34_s17, 2  ;;  %p266_p1 = scmp.ne.s32.totalorder %s1107_s11, %s1103_s10 }
   0x9   : > { %p267_p2 = scmp.eq.s32.totalorder %s912_s15, 1  ;;  %p272_p3 = scmp.ne.s32.totalorder %s1103_s10, %s1099_s30 }
   0xa   : > { %s1406_s17 = smov (%p36_p0, %s34_s17), 0  ;;  %p273_p5 = scmp.eq.s32.totalorder %s913_s16, 1 }
   0xb   : > { %p1216_p4 = por %p267_p2, %p266_p1  ;;  %s251_s20 = ssub.s32 %s1115_s13, %s1406_s17 }
   0xc   : > { %p916_p6 = scmp.ge.s32.totalorder %s1119_s14, 1  ;;  %p254_p7 = scmp.eq.s32.totalorder %s251_s20, 0 }
   0xd   : > { %p1223_p8 = por %p273_p5, %p272_p3  ;;  %p340_p9 = scmp.lt.s32.totalorder %s1119_s14, 3 }
   0xe   : > { %s1229_s22 = scalar_select %p254_p7, %s1107_s11, %s256_s18  }
   0xf   : > { %p341_p10 = pnand %p916_p6, %p340_p9 }
  0x10   : > { %p393_p11 = scmp.lt.s32.totalorder (!%p341_p10), %s1111_s12, 1  ;;  %s1397_s0 = sld [smem:[#allocation5_spill]] (!%p341_p10) }
  0x11   : > { %344 = sbr.rel (%p341_p10) target bundleno = 702 (0x2be), region = 56 }
  0x16   : > { %v1121_v0 = vmov 0   ;;  %v1122_v1 = vmov 2   ;;  %s1233_s23 = scalar_select %p393_p11, %s1111_s12, 1  ;;  %v1123_v3 = vmov 1   ;;  %v443_v16 = vlaneseq }
  0x17   : > { %1027 = vset.pattern.permute.xlu0 %v1121_v0  ;;  %1029 = vset.pattern.permute.xlu1 %v1122_v1 }
  0x18   : > { %1031 = vset.pattern.permute.xlu2 %v1121_v0  ;;  %s919_s24 = sshll.u32 %s1233_s23, 3  ;;  %s918_s28 = sshll.u32 %s1233_s23, 2  ;;  %v444_v19 = vshrl.u32 %v443_v16, 7 }
  0x19   : > { %s403_s27 = scalar_lea.vmem %s1385_s1, %s919_s24  ;;  %s399_s16 = scalar_lea.vmem %s1397_s0, %s918_s28 }
  0x1a   : > { %v417_v2 = vld [vmem:[%s403_s27] sm:$0xff]  ;;  %s407_s24 = scalar_lea.vmem %s1386_s2, %s918_s28  ;;  %s921_s25 = sshll.u32 %s1233_s23, 1 }
  0x1b   : > { %421 = vperm.xlu0 %1027, %v417_v2   ;;  %436 = vperm.xlu1 %1029, %v417_v2   ;;  %v416_v5 = vld [vmem:[%s399_s16] sm:$0x7]  ;;  %s414_s29 = scalar_lea.vmem %s1387_s3, %s921_s25  ;;  %s964_s27 = sshll.u32 %s1111_s12, 5 }
  0x1c   : > { %v424_v6 = vperm.slane %v416_v5, 0  ;;  %v439_v7 = vperm.slane %v416_v5, 2  ;;  %v431_v9 = vperm.slane %v416_v5, 1  ;;  %s788_s16 = scalar_lea.hbm %s1393_s9, %s964_s27 }
  0x1d   : > { %s791_s18 = sshll.u32 %s788_s16, 4  ;;  %s792_s18 = int_to_ptr.hbm [resolvable:$true] %s791_s18 }
  0x1e   : > { %s1055_s23 = sshra.s32 %s792_s18, 4  ;;  %s1056_s23 = int_to_ptr.hbm [resolvable:$true] %s1055_s23 }
  0x1f   : > { %s1057_s20 = scalar_lea.hbm %s1056_s23, 32  ;;  %p1062_p1 = scmp.lt.s32.totalorder %s1056_s23, %s1393_s9 }
  0x20   : > { %p1058_p12 = scmp.ne.s32.totalorder %s1056_s23, %s1057_s20 }
  0x22   : > { %p1059_p13 = pnand %p1058_p12, %p1216_p4 }
  0x23   : > { %1028 = vset.pattern.permute.xlu0 %v1123_v3  ;;  %1030 = vset.pattern.permute.xlu1 %v1121_v0 }
  0x24   : > { %428 = vperm.xlu0 %1028, %v417_v2   ;;  %p1060_p0 = pneg %p1059_p13 }
  0x2c   : > { %1032 = vset.pattern.permute.xlu0 %v1121_v0 }
  0x8d   : > { %v422_v4 = vpop.permute.xlu0 %421  ;;  %v437_v8 = vpop.permute.xlu1 %436 }
  0x8e   : > { %v425_v10 = vsub.f32 %v422_v4, %v424_v6  ;;  %v440_v11 = vsub.f32 %v437_v8, %v439_v7 }
  0x90   : > { %v426_v14 = vmul.f32 %v425_v10, %v425_v10  ;;  %v441_v17 = vmul.f32 %v440_v11, %v440_v11 }
  0x96   : > { %v429_v12 = vpop.permute.xlu0 %428 }
  0x97   : > { %v432_v13 = vsub.f32 %v429_v12, %v431_v9 }
  0x99   : > { %v433_v15 = vmul.f32 %v432_v13, %v432_v13 }
  0x9b   : > { %v434_v18 = vadd.f32 %v433_v15, %v426_v14 }
  0x9d   : > { %v442_v20 = vadd.f32 %v441_v17, %v434_v18 }
  0x9f   : > { %v446_v21 = vand.u32 4294967288, %v442_v20 }
  0xa1   : > { %v1245_v22 = vor.u32 %v446_v21, %v444_v19 }
  0xa3   : > { %v448_v23 = vrot.slane %v1245_v22, 4 }
  0xa5   : > { %vm449_vm0 = vcmp.lt.s32.totalorder %v1245_v22, %v448_v23 }
  0xa6   : > { %v450_v24 = vsel %vm449_vm0, %v1245_v22, %v448_v23 }
  0xa7   : > { %v451_v25 = vrot.slane %v450_v24, 2 }
  0xa9   : > { %vm452_vm1 = vcmp.lt.s32.totalorder %v450_v24, %v451_v25 }
  0xaa   : > { %v453_v26 = vsel %vm452_vm1, %v450_v24, %v451_v25 }
  0xab   : > { %v454_v27 = vrot.slane %v453_v26, 1 }
  0xad   : > { %vm455_vm2 = vcmp.lt.s32.totalorder %v453_v26, %v454_v27 }
  0xae   : > { %v1250_v28 = vsel %vm455_vm2, %v453_v26, %v454_v27 }
  0xaf   : > { %vm459_vm3 = vcmp.eq.s32.totalorder %v1245_v22, %v1250_v28  ;;  %v457_v33 = vand.u32 4294967288, %v1250_v28  ;;  %v418_v28 = vld [vmem:[%s407_s24] sm:$0xf]  ;;  %s390_s24 = sand.u32 1, %s1103_s10  }
  0xb0   : > { %v1258_v29 = vsel %vm459_vm3, 2147483647, %v1245_v22  ;;  %s917_s25 = sshll.u32 %s390_s24, 5  ;;  %s776_s12 = scalar_lea.sflag [#allocation3], %s390_s24 }
  0xb1   : > { %v480_v30 = vrot.slane %v1258_v29, 4  ;;  %v460_v36 = vadd.f32 1e-08, %v457_v33  ;;  %s392_s26 = scalar_lea.vmem [#allocation2], %s917_s25 }
  0xb2   : > { %s789_s28 = sshll.u32 %s392_s26, 4  ;;  %s790_s28 = int_to_ptr.vmem [resolvable:$true] %s789_s28 }
  0xb3   : > { %vm481_vm4 = vcmp.lt.s32.totalorder %v1258_v29, %v480_v30  ;;  %1033 = vrcp.f32 %v460_v36  ;;  %vm466_vm14 = vweird.f32 %v460_v36  ;;  %v472_v63 = vand.u32 2147483648, %v460_v36 }
  0xb4   : > { %v482_v31 = vsel %vm481_vm4, %v1258_v29, %v480_v30  ;;  %v470_v1 = vand.u32 2147483647, %v460_v36 }
  0xb5   : > { %v483_v32 = vrot.slane %v482_v31, 2  ;;  %v473_v9 = vor.u32 1.1754944e-38, %v472_v63 }
  0xb6   : > { %vm471_vm4 = vcmp.eq.f32.partialorder %v470_v1, 8.507059e+37 }
  0xb7   : > { %vm484_vm5 = vcmp.lt.s32.totalorder %v482_v31, %v483_v32 }
  0xb8   : > { %v485_v34 = vsel %vm484_vm5, %v482_v31, %v483_v32 }
  0xb9   : > { %v486_v35 = vrot.slane %v485_v34, 1  ;;  %v1034_v44 = vpop.eup %1033 }
  0xba   : > { %v462_v49 = vmul.f32 %v1034_v44, %v460_v36  ;;  %vm467_vm12 = vweird.f32 %v1034_v44 }
  0xbb   : > { %vm487_vm6 = vcmp.lt.s32.totalorder %v485_v34, %v486_v35  ;;  %vm1278_vm0 = vmor %vm466_vm14, %vm467_vm12  ;;  %vm608_vm14 = vcmask 1041408  }
  0xbc   : > { %v1264_v37 = vsel %vm487_vm6, %v485_v34, %v486_v35  ;;  %v463_v53 = vsub.f32 1.0, %v462_v49  ;;  %v709_v49 = vld [vmem:[%s1392_s8 + $0x10] sm:$0xff] }
  0xbd   : > { %v489_v38 = vand.u32 4294967288, %v1264_v37  ;;  %vm491_vm7 = vcmp.eq.s32.totalorder %v1258_v29, %v1264_v37  ;;  %v590_v37 = vld [vmem:[%s414_s29] sm:$0x3]  ;;  %s1061_s29 = scalar_lea.hbm %s1393_s9, 64 }
  0xbe   : > { %v1273_v39 = vsel %vm491_vm7, 2147483647, %v1258_v29  ;;  %v464_v56 = vmul.f32 %v1034_v44, %v463_v53  ;;  %v959_v53 = vld [vmem:[%s1388_s4 + $0x8] sm:$0xff]  ;;  %p1063_p2 = scmp.lt.s32.totalorder %s1061_s29, %s1057_s20 }
  0xbf   : > { %v492_v40 = vadd.f32 1e-08, %v489_v38  ;;  %v512_v41 = vrot.slane %v1273_v39, 4  ;;  %v610_v38 = vsel %vm608_vm14, %v590_v37, 0 }
  0xc0   : > { %v465_v59 = vadd.f32 %v1034_v44, %v464_v56  ;;  %619 = vmatpush.bf16.msra.mxu1 %v610_v38  ;;  %p1064_p3 = por %p1063_p2, %p1062_p1 }
  0xc1   : > { %1035 = vrcp.f32 %v492_v40  ;;  %vm513_vm8 = vcmp.lt.s32.totalorder %v1273_v39, %v512_v41  ;;  %v504_v60 = vand.u32 2147483648, %v492_v40  ;;  %vm498_vm13 = vweird.f32 %v492_v40 }
  0xc2   : > { %v514_v42 = vsel %vm513_vm8, %v1273_v39, %v512_v41  ;;  %v502_v61 = vand.u32 2147483647, %v492_v40  ;;  %v469_v4 = vsel %vm1278_vm0, %v1034_v44, %v465_v59  ;;  %v671_v41 = vld [vmem:[%s1390_s6 + $0x10] sm:$0xff]  ;;  %v669_v44 = vld [vmem:[%s1390_s6] sm:$0xff]  ;;  %vm741_vm0 = vcmask 261120   ;;  %p1065_p5 = pnand %p1064_p3, %p1060_p0 }
  0xc3   : > { %v515_v43 = vrot.slane %v514_v42, 2  ;;  %v505_v5 = vor.u32 1.1754944e-38, %v504_v60  ;;  %v474_v12 = vsel %vm471_vm4, %v473_v9, %v469_v4  ;;  %685 = vperm.xlu1 %1030, %v671_v41  }
  0xc4   : > { %vm503_vm1 = vcmp.eq.f32.partialorder %v502_v61, 8.507059e+37  ;;  %v476_v26 = vsel %vm459_vm3, %v474_v12, 0.0  ;;  %vm560_vm3 = vcmask 64512  }
  0xc5   : > { %vm516_vm9 = vcmp.lt.s32.totalorder %v514_v42, %v515_v43 }
  0xc6   : > { %v517_v46 = vsel %vm516_vm9, %v514_v42, %v515_v43  ;;  %v672_v42 = vld [vmem:[%s1390_s6 + $0x18] sm:$0xff]  ;;  %v670_v43 = vld [vmem:[%s1390_s6 + $0x8] sm:$0xff] }
  0xc7   : > { %v1036_v45 = vpop.eup %1035  ;;  %v518_v47 = vrot.slane %v517_v46, 1  ;;  %690 = vperm.xlu2 %1031, %v672_v42  }
  0xc8   : > { %v494_v48 = vmul.f32 %v1036_v45, %v492_v40  ;;  %vm499_vm11 = vweird.f32 %v1036_v45  ;;  %v961_v40 = vld [vmem:[%s1389_s5 + $0x8] sm:$0xff] }
  0xc9   : > { %vm519_vm10 = vcmp.lt.s32.totalorder %v517_v46, %v518_v47  ;;  %vm500_vm15 = vmor %vm498_vm13, %vm499_vm11  ;;  %vm564_vm13 = vcmask 1043456  }
  0xca   : > { %v520_v50 = vsel %vm519_vm10, %v517_v46, %v518_v47  ;;  %v495_v52 = vsub.f32 1.0, %v494_v48  ;;  %v958_v48 = vld [vmem:[%s1388_s4] sm:$0xff] }
  0xcb   : > { %v521_v51 = vand.u32 4294967288, %v520_v50  ;;  %vm523_vm9 = vcmp.eq.s32.totalorder %v1273_v39, %v520_v50  ;;  %v960_v39 = vld [vmem:[%s1389_s5] sm:$0xff]  ;;  %680 = vperm.xlu1 %1030, %v670_v43  }
  0xcc   : > { %v496_v55 = vmul.f32 %v1036_v45, %v495_v52  ;;  %v707_v50 = vld [vmem:[%s1392_s8] sm:$0xff]  ;;  %v710_v52 = vld [vmem:[%s1392_s8 + $0x18] sm:$0xff] }
  0xcd   : > { %v524_v54 = vadd.f32 1e-08, %v521_v51 }
  0xce   : > { %v497_v57 = vadd.f32 %v1036_v45, %v496_v55 }
  0xcf   : > { %1037 = vrcp.f32 %v524_v54  ;;  %v536_v6 = vand.u32 2147483648, %v524_v54  ;;  %v534_v8 = vand.u32 2147483647, %v524_v54  ;;  %vm530_vm5 = vweird.f32 %v524_v54  ;;  %675 = vperm.xlu2 %1031, %v669_v44  }
  0xd0   : > { %v501_v2 = vsel %vm500_vm15, %v1036_v45, %v497_v57  ;;  %vm601_vm15 = vcmask 31744  }
  0xd1   : > { %v506_v10 = vsel %vm503_vm1, %v505_v5, %v501_v2  ;;  %v537_v13 = vor.u32 1.1754944e-38, %v536_v6  ;;  %vm535_vm8 = vcmp.eq.f32.partialorder %v534_v8, 8.507059e+37  ;;  %931 = vmatmul.msk.bf16.vlgmr.msra.gmra.mxu1 %vm601_vm15, %v960_v39 }
  0xd2   : > { %v510_v14 = vadd.f32 %v506_v10, %v474_v12  ;;  %v508_v21 = vsel %vm491_vm7, %v506_v10, 0.0 }
  0xd3   : > { %v509_v30 = vadd.f32 %v508_v21, %v476_v26  ;;  %723 = vperm.xlu1 %1030, %v709_v49  }
  0xd5   : > { %v1038_v58 = vpop.eup %1037 }
  0xd6   : > { %v526_v62 = vmul.f32 %v1038_v58, %v524_v54  ;;  %vm531_vm2 = vweird.f32 %v1038_v58 }
  0xd7   : > { %vm532_vm6 = vmor %vm530_vm5, %vm531_vm2  ;;  %713 = vperm.xlu2 %1031, %v707_v50  }
  0xd8   : > { %v527_v3 = vsub.f32 1.0, %v526_v62 }
  0xda   : > { %v528_v7 = vmul.f32 %v1038_v58, %v527_v3 }
  0xdc   : > { %v529_v11 = vadd.f32 %v1038_v58, %v528_v7 }
  0xde   : > { %v533_v15 = vsel %vm532_vm6, %v1038_v58, %v529_v11  ;;  %v708_v58 = vld [vmem:[%s1392_s8 + $0x8] sm:$0xff] }
  0xdf   : > { %v538_v16 = vsel %vm535_vm8, %v537_v13, %v533_v15  ;;  %728 = vperm.xlu2 %1031, %v710_v52   ;;  %718 = vperm.xlu0 %1032, %v708_v58  }
  0xe0   : > { %v542_v17 = vadd.f32 %v538_v16, %v510_v14  ;;  %v540_v27 = vsel %vm523_vm9, %v538_v16, 0.0 }
  0xe1   : > { %v541_v29 = vadd.f32 %v540_v27, %v509_v30  ;;  %932 = vmatmul.msk.bf16.gmra.mxu1 %vm601_vm15, %v961_v40 }
  0xe2   : > { %1039 = vrcp.f32 %v542_v17  ;;  %v554_v23 = vand.u32 2147483648, %v542_v17  ;;  %v552_v25 = vand.u32 2147483647, %v542_v17  ;;  %vm548_vm11 = vweird.f32 %v542_v17 }
  0xe4   : > { %v555_v32 = vor.u32 1.1754944e-38, %v554_v23  ;;  %vm553_vm7 = vcmp.eq.f32.partialorder %v552_v25, 8.507059e+37 }
  0xe8   : > { %v1040_v18 = vpop.eup %1039 }
  0xe9   : > { %v544_v19 = vmul.f32 %v1040_v18, %v542_v17  ;;  %vm549_vm10 = vweird.f32 %v1040_v18  ;;  %v962_v17 = vld [vmem:[%s1391_s7] sm:$0xff] }
  0xea   : > { %vm550_vm12 = vmor %vm548_vm11, %vm549_vm10 }
  0xeb   : > { %v545_v20 = vsub.f32 1.0, %v544_v19 }
  0xed   : > { %v546_v24 = vmul.f32 %v1040_v18, %v545_v20 }
  0xef   : > { %v547_v31 = vadd.f32 %v1040_v18, %v546_v24 }
  0xf1   : > { %v551_v33 = vsel %vm550_vm12, %v1040_v18, %v547_v31  ;;  %v963_v18 = vld [vmem:[%s1391_s7 + $0x8] sm:$0xff] }
  0xf2   : > { %v556_v34 = vsel %vm553_vm7, %v555_v32, %v551_v33 }
  0xf3   : > { %v558_v35 = vmul.f32 %v556_v34, %v541_v29 }
  0xf5   : > { %v559_v36 = vpack.c.bf16 %v558_v35, %v558_v35 }
  0xf7   : > { %v566_v22 = vsel %vm564_vm13, %v559_v36, 0 }
  0xf8   : > { %575 = vmatpush.bf16.msra.mxu0 %v566_v22 }
  0xfb   : > { %922 = vmatmul.msk.bf16.vlgmr.msra.gmra.mxu0 %vm560_vm3, %v418_v28 }
 0x121   : > { %v691_v61 = vpop.permute.xlu2 %690 }
 0x129   : > { %v676_v7 = vpop.permute.xlu2 %675 }
 0x131   : > { %v714_v19 = vpop.permute.xlu2 %713 }
 0x135   : > { %v686_v59 = vpop.permute.xlu1 %685 }
 0x139   : > { %v729_v33 = vpop.permute.xlu2 %728 }
 0x13d   : > { %v681_v1 = vpop.permute.xlu1 %680 }
 0x145   : > { %v724_v24 = vpop.permute.xlu1 %723 }
 0x14e   : > { %v621_v54 = vpop.f32.mrf.mxu1 }
 0x151   : > { %v719_v26 = vpop.permute.xlu0 %718 }
 0x156   : > { %v623_v56 = vpop.f32.mrf.mxu1 }
 0x15e   : > { %v626_v60 = vpop.f32.mrf.mxu1 }
 0x166   : > { %v628_v2 = vpop.f32.mrf.mxu1 }
 0x178   : > { %v577_v45 = vpop.f32.mrf.mxu0 }
 0x179   : > { %v585_v46 = vpack.c.bf16 %v577_v45, %v577_v45 }
 0x17b   : > { %v648_v47 = vsel %vm564_vm13, %v585_v46, 0 }
 0x17c   : > { %657 = vmatpush.bf16.msra.mxu2 %v648_v47 }
 0x17f   : > { %941 = vmatmul.msk.bf16.vlgmr.msra.gmra.mxu2 %vm560_vm3, %v958_v48 }
 0x180   : > { %v579_v51 = vpop.f32.mrf.mxu0 }
 0x18f   : > { %942 = vmatmul.msk.bf16.gmra.mxu2 %vm560_vm3, %v959_v53 }
 0x202   : > { %v659_v55 = vpop.f32.mrf.mxu2 }
 0x203   : > { %v660_v4 = vadd.f32 %v659_v55, %v621_v54 }
 0x205   : > { %v693_v10 = vadd.f32 %v676_v7, %v660_v4 }
 0x207   : > { %v697_v15 = vmax.f32 %v693_v10, 0.0 }
 0x20a   : > { %v661_v57 = vpop.f32.mrf.mxu2 }
 0x20b   : > { %v662_v0 = vadd.f32 %v661_v57, %v623_v56 }
 0x20d   : > { %v694_v8 = vadd.f32 %v681_v1, %v662_v0 }
 0x20f   : > { %v698_v13 = vmax.f32 %v694_v8, 0.0 }
 0x211   : > { %v705_v16 = vpack.c.bf16 %v698_v13, %v697_v15 }
 0x212   : > { %v664_v62 = vpop.f32.mrf.mxu2 }
 0x213   : > { %v665_v63 = vadd.f32 %v664_v62, %v626_v60 }
 0x215   : > { %v695_v5 = vadd.f32 %v686_v59, %v665_v63 }
 0x217   : > { %v699_v11 = vmax.f32 %v695_v5, 0.0 }
 0x21a   : > { %v666_v3 = vpop.f32.mrf.mxu2 }
 0x21b   : > { %v667_v6 = vadd.f32 %v666_v3, %v628_v2 }
 0x21d   : > { %v696_v9 = vadd.f32 %v691_v61, %v667_v6 }
 0x21f   : > { %v700_v12 = vmax.f32 %v696_v9, 0.0 }
 0x221   : > { %v706_v14 = vpack.c.bf16 %v700_v12, %v699_v11 }
 0x223   : > { %754 = vmatpush.bf16.msrb.mxu0 %v706_v14  ;;  %965 = vmatpush.bf16.msra.mxu3 %v706_v14 }
 0x227   : > { %755 = vmatpush.bf16.msrb.mxu0 %v705_v16  ;;  %966 = vmatpush.bf16.msra.mxu3 %v705_v16 }
 0x22a   : > { %951 = vmatmul.msk.bf16.vlgmr.msrb.gmra.mxu0 %vm741_vm0, %v962_v17  ;;  %952 = vmatmul.msk.bf16.vlgmr.msra.gmra.mxu3 %vm741_vm0, %v963_v18 }
 0x2a7   : > { %v757_v20 = vpop.f32.mrf.mxu0 }
 0x2a8   : > { %v758_v21 = vadd.f32 %v757_v20, %v714_v19 }
 0x2aa   : > { %v767_v23 = vmax.f32 %v758_v21, 0.0 }
 0x2ac   : > { %771 = vst [vmem:[%s392_s26] sm:$0xff] %v767_v23 }
 0x2ad   : > { %v762_v25 = vpop.f32.mrf.mxu3 }
 0x2ae   : > { %v763_v27 = vadd.f32 %v762_v25, %v724_v24 }
 0x2af   : > { %v759_v30 = vpop.f32.mrf.mxu0 }
 0x2b0   : > { %v769_v31 = vmax.f32 %v763_v27, 0.0  ;;  %v760_v32 = vadd.f32 %v759_v30, %v719_v26 }
 0x2b2   : > { %773 = vst [vmem:[%s392_s26 + $0x10] sm:$0xff] %v769_v31  ;;  %v768_v29 = vmax.f32 %v760_v32, 0.0 }
 0x2b4   : > { %772 = vst [vmem:[%s392_s26 + $0x8] sm:$0xff] %v768_v29 }
 0x2b5   : > { %v764_v34 = vpop.f32.mrf.mxu3 }
 0x2b6   : > { %v765_v35 = vadd.f32 %v764_v34, %v729_v33 }
 0x2b8   : > { %v770_v36 = vmax.f32 %v765_v35, 0.0 }
 0x2ba   : > { %774 = vst [vmem:[%s392_s26 + $0x18] sm:$0xff] %v770_v36 }
 0x2bb   : > { %1068 = shalt.err (!%p1065_p5)
}
 0x2bc   : > { %s1124_s24 = smov 128   ;;  %s1125_s26 = smov 8  }
 0x2bd   : > { %967 = dma.vmem_to_hbm [thread:$0]  (%p1216_p4), %s790_s28, 512, %s792_s18, %s776_s12, %s1124_s24, %s1124_s24, %s1125_s26  }
 0x2be PF: > { %p973_p6 = scmp.ge.s32.totalorder %s1119_s14, 2  ;;  %s806_s16 = sand.u32 1, %s1099_s30  }
 0x2bf   : > { %s807_s0 = scalar_lea.sflag [#allocation3], %s806_s16 }
 0x2c0   : > { %p970_p7 = pnand %p973_p6, %p1223_p8 }
 0x2c2   : > { %p971_p9 = pneg %p970_p7 }
 0x2c4   : > { %1094 = dma.done.wait (%p971_p9), %s807_s0, 512  }
 0x2c5   : > { %1096 = vsyncadd (%p971_p9), %s807_s0, 4294966784  ;;  %s22_s14 = sadd.s32 1, %s1119_s14   ;;  %s1400_s30 = smov %s1103_s10 }
 0x2c6   : > { %p19_p10 = scmp.ge.s32.totalorder %s22_s14, 4   ;;  %s1401_s10 = smov %s1107_s11 }
 0x2c7   : > { %s1402_s11 = smov %s1229_s22  ;;  %s1403_s12 = smov %s1115_s13 }
 0x2c8   : > { %s1404_s13 = smov %s1406_s17  ;;  %21 = sbr.rel (!%p19_p10) target bundleno = 6 (0x6), region = 100 }
 0x2cd   :  { %813 = vsyncpa [#allocation3], 1 }
 0x2ce   :  { %815 = vsyncpa [#allocation3 + $0x1], 1 }

// kernel: tpu_custom_call.1
= control target key start
LH: loop header
LB: loop body
LE: loop exit
PB: predicated region body
PF: predicated region fallthrough
CT: control target
= control target key end

     0   :  { %s1378_s0 = inlined_call_operand.vmem [shape: f32[2,3,128], index: 0, kind: input, shape index: {}]   ;;  %s1379_s1 = inlined_call_operand.vmem [shape: f32[2,8,3], index: 1, kind: input, shape index: {}]   ;;  %s1380_s2 = inlined_call_operand.vmem [shape: bf16[2,8,8], index: 2, kind: input, shape index: {}]   ;;  %s1381_s3 = inlined_call_operand.vmem [shape: bf16[2,4,128], index: 3, kind: input, shape index: {}]   ;;  %s1382_s4 = inlined_call_operand.vmem [shape: bf16[32,8], index: 4, kind: input, shape index: {}]   ;;  %s1383_s5 = inlined_call_operand.vmem [shape: bf16[32,4], index: 5, kind: input, shape index: {}]   ;;  %s1384_s6 = inlined_call_operand.vmem [shape: f32[32,1], index: 6, kind: input, shape index: {}]   ;;  %s1385_s7 = inlined_call_operand.vmem [shape: bf16[32,32], index: 7, kind: input, shape index: {}]   ;;  %s1386_s8 = inlined_call_operand.vmem [shape: f32[32,1], index: 8, kind: input, shape index: {}]   ;;  %s1387_s9 = inlined_call_operand.hbm [shape: f32[2,32,128], index: 9, kind: output, shape index: {}]  }
   0x1   :  { %1388 = sst [smem:[#allocation5_spill]] %s1378_s0 }
   0x2   :  { %14 = vsyncpa [#allocation3], 0 }
   0x3   :  { %16 = vsyncpa [#allocation3 + $0x1], 0  ;;  %s1170_s30 = smov 0   ;;  %s1172_s10 = smov 0  }
   0x4   :  { %s1174_s11 = smov 0   ;;  %s1176_s12 = smov 0  }
   0x5   :  { %s1178_s13 = smov 0   ;;  %s1180_s14 = smov 0  }
   0x6 LB: > { %s906_s15 = sadd.s32 4294967295, %s1113_s14   ;;  %s907_s16 = sadd.s32 4294967294, %s1113_s14   ;;  %s1113_s14 = sphi %s1180_s14, %s22_s14   ;;  %s1109_s13 = sphi %s1178_s13, %s1398_s13   ;;  %s1105_s12 = sphi %s1176_s12, %s1397_s12   ;;  %s1101_s11 = sphi %s1174_s11, %s1396_s11   ;;  %s1097_s10 = sphi %s1172_s10, %s1395_s10   ;;  %s1093_s30 = sphi %s1170_s30, %s1394_s30  }
   0x7   : > { %s34_s17 = sadd.s32 1, %s1109_s13  ;;  %s256_s18 = sadd.s32 1, %s1101_s11 }
   0x8   : > { %p36_p0 = scmp.ge.s32.totalorder %s34_s17, 2  ;;  %p266_p1 = scmp.ne.s32.totalorder %s1101_s11, %s1097_s10 }
   0x9   : > { %p267_p2 = scmp.eq.s32.totalorder %s906_s15, 1  ;;  %p272_p3 = scmp.ne.s32.totalorder %s1097_s10, %s1093_s30 }
   0xa   : > { %s1400_s17 = smov (%p36_p0, %s34_s17), 0  ;;  %p273_p5 = scmp.eq.s32.totalorder %s907_s16, 1 }
   0xb   : > { %p1210_p4 = por %p267_p2, %p266_p1  ;;  %s251_s20 = ssub.s32 %s1109_s13, %s1400_s17 }
   0xc   : > { %p910_p6 = scmp.ge.s32.totalorder %s1113_s14, 1  ;;  %p254_p7 = scmp.eq.s32.totalorder %s251_s20, 0 }
   0xd   : > { %p1217_p8 = por %p273_p5, %p272_p3  ;;  %p340_p9 = scmp.lt.s32.totalorder %s1113_s14, 3 }
   0xe   : > { %s1223_s22 = scalar_select %p254_p7, %s1101_s11, %s256_s18  }
   0xf   : > { %p341_p10 = pnand %p910_p6, %p340_p9 }
  0x10   : > { %p393_p11 = scmp.lt.s32.totalorder (!%p341_p10), %s1105_s12, 1  ;;  %s1391_s0 = sld [smem:[#allocation5_spill]] (!%p341_p10) }
  0x11   : > { %344 = sbr.rel (%p341_p10) target bundleno = 702 (0x2be), region = 56 }
  0x16   : > { %v1115_v0 = vmov 0   ;;  %v1116_v1 = vmov 2   ;;  %s1227_s23 = scalar_select %p393_p11, %s1105_s12, 1  ;;  %v1117_v3 = vmov 1   ;;  %v443_v16 = vlaneseq }
  0x17   : > { %1021 = vset.pattern.permute.xlu0 %v1115_v0  ;;  %1023 = vset.pattern.permute.xlu1 %v1116_v1 }
  0x18   : > { %1025 = vset.pattern.permute.xlu2 %v1115_v0  ;;  %s913_s24 = sshll.u32 %s1227_s23, 3  ;;  %s912_s28 = sshll.u32 %s1227_s23, 2  ;;  %v444_v19 = vshrl.u32 %v443_v16, 7 }
  0x19   : > { %s403_s27 = scalar_lea.vmem %s1379_s1, %s913_s24  ;;  %s399_s16 = scalar_lea.vmem %s1391_s0, %s912_s28 }
  0x1a   : > { %v417_v2 = vld [vmem:[%s403_s27] sm:$0xff]  ;;  %s407_s24 = scalar_lea.vmem %s1380_s2, %s912_s28  ;;  %s915_s25 = sshll.u32 %s1227_s23, 1 }
  0x1b   : > { %421 = vperm.xlu0 %1021, %v417_v2   ;;  %436 = vperm.xlu1 %1023, %v417_v2   ;;  %v416_v5 = vld [vmem:[%s399_s16] sm:$0x7]  ;;  %s414_s29 = scalar_lea.vmem %s1381_s3, %s915_s25  ;;  %s958_s27 = sshll.u32 %s1105_s12, 5 }
  0x1c   : > { %v424_v6 = vperm.slane %v416_v5, 0  ;;  %v439_v7 = vperm.slane %v416_v5, 2  ;;  %v431_v9 = vperm.slane %v416_v5, 1  ;;  %s788_s16 = scalar_lea.hbm %s1387_s9, %s958_s27 }
  0x1d   : > { %s791_s18 = sshll.u32 %s788_s16, 4  ;;  %s792_s18 = int_to_ptr.hbm [resolvable:$true] %s791_s18 }
  0x1e   : > { %s1049_s23 = sshra.s32 %s792_s18, 4  ;;  %s1050_s23 = int_to_ptr.hbm [resolvable:$true] %s1049_s23 }
  0x1f   : > { %s1051_s20 = scalar_lea.hbm %s1050_s23, 32  ;;  %p1056_p1 = scmp.lt.s32.totalorder %s1050_s23, %s1387_s9 }
  0x20   : > { %p1052_p12 = scmp.ne.s32.totalorder %s1050_s23, %s1051_s20 }
  0x22   : > { %p1053_p13 = pnand %p1052_p12, %p1210_p4 }
  0x23   : > { %1022 = vset.pattern.permute.xlu0 %v1117_v3  ;;  %1024 = vset.pattern.permute.xlu1 %v1115_v0 }
  0x24   : > { %428 = vperm.xlu0 %1022, %v417_v2   ;;  %p1054_p0 = pneg %p1053_p13 }
  0x2c   : > { %1026 = vset.pattern.permute.xlu0 %v1115_v0 }
  0x8d   : > { %v422_v4 = vpop.permute.xlu0 %421  ;;  %v437_v8 = vpop.permute.xlu1 %436 }
  0x8e   : > { %v425_v10 = vsub.f32 %v422_v4, %v424_v6  ;;  %v440_v11 = vsub.f32 %v437_v8, %v439_v7 }
  0x90   : > { %v426_v14 = vmul.f32 %v425_v10, %v425_v10  ;;  %v441_v17 = vmul.f32 %v440_v11, %v440_v11 }
  0x96   : > { %v429_v12 = vpop.permute.xlu0 %428 }
  0x97   : > { %v432_v13 = vsub.f32 %v429_v12, %v431_v9 }
  0x99   : > { %v433_v15 = vmul.f32 %v432_v13, %v432_v13 }
  0x9b   : > { %v434_v18 = vadd.f32 %v433_v15, %v426_v14 }
  0x9d   : > { %v442_v20 = vadd.f32 %v441_v17, %v434_v18 }
  0x9f   : > { %v446_v21 = vand.u32 4294967288, %v442_v20 }
  0xa1   : > { %v1239_v22 = vor.u32 %v446_v21, %v444_v19 }
  0xa3   : > { %v448_v23 = vrot.slane %v1239_v22, 4 }
  0xa5   : > { %vm449_vm0 = vcmp.lt.s32.totalorder %v1239_v22, %v448_v23 }
  0xa6   : > { %v450_v24 = vsel %vm449_vm0, %v1239_v22, %v448_v23 }
  0xa7   : > { %v451_v25 = vrot.slane %v450_v24, 2 }
  0xa9   : > { %vm452_vm1 = vcmp.lt.s32.totalorder %v450_v24, %v451_v25 }
  0xaa   : > { %v453_v26 = vsel %vm452_vm1, %v450_v24, %v451_v25 }
  0xab   : > { %v454_v27 = vrot.slane %v453_v26, 1 }
  0xad   : > { %vm455_vm2 = vcmp.lt.s32.totalorder %v453_v26, %v454_v27 }
  0xae   : > { %v1244_v28 = vsel %vm455_vm2, %v453_v26, %v454_v27 }
  0xaf   : > { %vm459_vm3 = vcmp.eq.s32.totalorder %v1239_v22, %v1244_v28  ;;  %v457_v33 = vand.u32 4294967288, %v1244_v28  ;;  %v418_v28 = vld [vmem:[%s407_s24] sm:$0xf]  ;;  %s390_s24 = sand.u32 1, %s1097_s10  }
  0xb0   : > { %v1252_v29 = vsel %vm459_vm3, 2147483647, %v1239_v22  ;;  %s911_s25 = sshll.u32 %s390_s24, 5  ;;  %s776_s12 = scalar_lea.sflag [#allocation3], %s390_s24 }
  0xb1   : > { %v480_v30 = vrot.slane %v1252_v29, 4  ;;  %v460_v36 = vadd.f32 1e-08, %v457_v33  ;;  %s392_s26 = scalar_lea.vmem [#allocation2], %s911_s25 }
  0xb2   : > { %s789_s28 = sshll.u32 %s392_s26, 4  ;;  %s790_s28 = int_to_ptr.vmem [resolvable:$true] %s789_s28 }
  0xb3   : > { %vm481_vm4 = vcmp.lt.s32.totalorder %v1252_v29, %v480_v30  ;;  %1027 = vrcp.f32 %v460_v36  ;;  %vm466_vm14 = vweird.f32 %v460_v36  ;;  %v472_v63 = vand.u32 2147483648, %v460_v36 }
  0xb4   : > { %v482_v31 = vsel %vm481_vm4, %v1252_v29, %v480_v30  ;;  %v470_v1 = vand.u32 2147483647, %v460_v36 }
  0xb5   : > { %v483_v32 = vrot.slane %v482_v31, 2  ;;  %v473_v9 = vor.u32 1.1754944e-38, %v472_v63 }
  0xb6   : > { %vm471_vm4 = vcmp.eq.f32.partialorder %v470_v1, 8.507059e+37 }
  0xb7   : > { %vm484_vm5 = vcmp.lt.s32.totalorder %v482_v31, %v483_v32 }
  0xb8   : > { %v485_v34 = vsel %vm484_vm5, %v482_v31, %v483_v32 }
  0xb9   : > { %v486_v35 = vrot.slane %v485_v34, 1  ;;  %v1028_v44 = vpop.eup %1027 }
  0xba   : > { %v462_v49 = vmul.f32 %v1028_v44, %v460_v36  ;;  %vm467_vm12 = vweird.f32 %v1028_v44 }
  0xbb   : > { %vm487_vm6 = vcmp.lt.s32.totalorder %v485_v34, %v486_v35  ;;  %vm1272_vm0 = vmor %vm466_vm14, %vm467_vm12  ;;  %vm608_vm14 = vcmask 1041408  }
  0xbc   : > { %v1258_v37 = vsel %vm487_vm6, %v485_v34, %v486_v35  ;;  %v463_v53 = vsub.f32 1.0, %v462_v49  ;;  %v709_v49 = vld [vmem:[%s1386_s8 + $0x10] sm:$0xff] }
  0xbd   : > { %v489_v38 = vand.u32 4294967288, %v1258_v37  ;;  %vm491_vm7 = vcmp.eq.s32.totalorder %v1252_v29, %v1258_v37  ;;  %v590_v37 = vld [vmem:[%s414_s29] sm:$0x3]  ;;  %s1055_s29 = scalar_lea.hbm %s1387_s9, 64 }
  0xbe   : > { %v1267_v39 = vsel %vm491_vm7, 2147483647, %v1252_v29  ;;  %v464_v56 = vmul.f32 %v1028_v44, %v463_v53  ;;  %v953_v53 = vld [vmem:[%s1382_s4 + $0x8] sm:$0xff]  ;;  %p1057_p2 = scmp.lt.s32.totalorder %s1055_s29, %s1051_s20 }
  0xbf   : > { %v492_v40 = vadd.f32 1e-08, %v489_v38  ;;  %v512_v41 = vrot.slane %v1267_v39, 4  ;;  %v610_v38 = vsel %vm608_vm14, %v590_v37, 0 }
  0xc0   : > { %v465_v59 = vadd.f32 %v1028_v44, %v464_v56  ;;  %619 = vmatpush.bf16.msra.mxu1 %v610_v38  ;;  %p1058_p3 = por %p1057_p2, %p1056_p1 }
  0xc1   : > { %1029 = vrcp.f32 %v492_v40  ;;  %vm513_vm8 = vcmp.lt.s32.totalorder %v1267_v39, %v512_v41  ;;  %v504_v60 = vand.u32 2147483648, %v492_v40  ;;  %vm498_vm13 = vweird.f32 %v492_v40 }
  0xc2   : > { %v514_v42 = vsel %vm513_vm8, %v1267_v39, %v512_v41  ;;  %v502_v61 = vand.u32 2147483647, %v492_v40  ;;  %v469_v4 = vsel %vm1272_vm0, %v1028_v44, %v465_v59  ;;  %v671_v41 = vld [vmem:[%s1384_s6 + $0x10] sm:$0xff]  ;;  %v669_v44 = vld [vmem:[%s1384_s6] sm:$0xff]  ;;  %vm741_vm0 = vcmask 261120   ;;  %p1059_p5 = pnand %p1058_p3, %p1054_p0 }
  0xc3   : > { %v515_v43 = vrot.slane %v514_v42, 2  ;;  %v505_v5 = vor.u32 1.1754944e-38, %v504_v60  ;;  %v474_v12 = vsel %vm471_vm4, %v473_v9, %v469_v4  ;;  %685 = vperm.xlu1 %1024, %v671_v41  }
  0xc4   : > { %vm503_vm1 = vcmp.eq.f32.partialorder %v502_v61, 8.507059e+37  ;;  %v476_v26 = vsel %vm459_vm3, %v474_v12, 0.0  ;;  %vm560_vm3 = vcmask 64512  }
  0xc5   : > { %vm516_vm9 = vcmp.lt.s32.totalorder %v514_v42, %v515_v43 }
  0xc6   : > { %v517_v46 = vsel %vm516_vm9, %v514_v42, %v515_v43  ;;  %v672_v42 = vld [vmem:[%s1384_s6 + $0x18] sm:$0xff]  ;;  %v670_v43 = vld [vmem:[%s1384_s6 + $0x8] sm:$0xff] }
  0xc7   : > { %v1030_v45 = vpop.eup %1029  ;;  %v518_v47 = vrot.slane %v517_v46, 1  ;;  %690 = vperm.xlu2 %1025, %v672_v42  }
  0xc8   : > { %v494_v48 = vmul.f32 %v1030_v45, %v492_v40  ;;  %vm499_vm11 = vweird.f32 %v1030_v45  ;;  %v955_v40 = vld [vmem:[%s1383_s5 + $0x8] sm:$0xff] }
  0xc9   : > { %vm519_vm10 = vcmp.lt.s32.totalorder %v517_v46, %v518_v47  ;;  %vm500_vm15 = vmor %vm498_vm13, %vm499_vm11  ;;  %vm564_vm13 = vcmask 1043456  }
  0xca   : > { %v520_v50 = vsel %vm519_vm10, %v517_v46, %v518_v47  ;;  %v495_v52 = vsub.f32 1.0, %v494_v48  ;;  %v952_v48 = vld [vmem:[%s1382_s4] sm:$0xff] }
  0xcb   : > { %v521_v51 = vand.u32 4294967288, %v520_v50  ;;  %vm523_vm9 = vcmp.eq.s32.totalorder %v1267_v39, %v520_v50  ;;  %v954_v39 = vld [vmem:[%s1383_s5] sm:$0xff]  ;;  %680 = vperm.xlu1 %1024, %v670_v43  }
  0xcc   : > { %v496_v55 = vmul.f32 %v1030_v45, %v495_v52  ;;  %v707_v50 = vld [vmem:[%s1386_s8] sm:$0xff]  ;;  %v710_v52 = vld [vmem:[%s1386_s8 + $0x18] sm:$0xff] }
  0xcd   : > { %v524_v54 = vadd.f32 1e-08, %v521_v51 }
  0xce   : > { %v497_v57 = vadd.f32 %v1030_v45, %v496_v55 }
  0xcf   : > { %1031 = vrcp.f32 %v524_v54  ;;  %v536_v6 = vand.u32 2147483648, %v524_v54  ;;  %v534_v8 = vand.u32 2147483647, %v524_v54  ;;  %vm530_vm5 = vweird.f32 %v524_v54  ;;  %675 = vperm.xlu2 %1025, %v669_v44  }
  0xd0   : > { %v501_v2 = vsel %vm500_vm15, %v1030_v45, %v497_v57  ;;  %vm601_vm15 = vcmask 31744  }
  0xd1   : > { %v506_v10 = vsel %vm503_vm1, %v505_v5, %v501_v2  ;;  %v537_v13 = vor.u32 1.1754944e-38, %v536_v6  ;;  %vm535_vm8 = vcmp.eq.f32.partialorder %v534_v8, 8.507059e+37  ;;  %925 = vmatmul.msk.bf16.vlgmr.msra.gmra.mxu1 %vm601_vm15, %v954_v39 }
  0xd2   : > { %v510_v14 = vadd.f32 %v506_v10, %v474_v12  ;;  %v508_v21 = vsel %vm491_vm7, %v506_v10, 0.0 }
  0xd3   : > { %v509_v30 = vadd.f32 %v508_v21, %v476_v26  ;;  %723 = vperm.xlu1 %1024, %v709_v49  }
  0xd5   : > { %v1032_v58 = vpop.eup %1031 }
  0xd6   : > { %v526_v62 = vmul.f32 %v1032_v58, %v524_v54  ;;  %vm531_vm2 = vweird.f32 %v1032_v58 }
  0xd7   : > { %vm532_vm6 = vmor %vm530_vm5, %vm531_vm2  ;;  %713 = vperm.xlu2 %1025, %v707_v50  }
  0xd8   : > { %v527_v3 = vsub.f32 1.0, %v526_v62 }
  0xda   : > { %v528_v7 = vmul.f32 %v1032_v58, %v527_v3 }
  0xdc   : > { %v529_v11 = vadd.f32 %v1032_v58, %v528_v7 }
  0xde   : > { %v533_v15 = vsel %vm532_vm6, %v1032_v58, %v529_v11  ;;  %v708_v58 = vld [vmem:[%s1386_s8 + $0x8] sm:$0xff] }
  0xdf   : > { %v538_v16 = vsel %vm535_vm8, %v537_v13, %v533_v15  ;;  %728 = vperm.xlu2 %1025, %v710_v52   ;;  %718 = vperm.xlu0 %1026, %v708_v58  }
  0xe0   : > { %v542_v17 = vadd.f32 %v538_v16, %v510_v14  ;;  %v540_v27 = vsel %vm523_vm9, %v538_v16, 0.0 }
  0xe1   : > { %v541_v29 = vadd.f32 %v540_v27, %v509_v30  ;;  %926 = vmatmul.msk.bf16.gmra.mxu1 %vm601_vm15, %v955_v40 }
  0xe2   : > { %1033 = vrcp.f32 %v542_v17  ;;  %v554_v23 = vand.u32 2147483648, %v542_v17  ;;  %v552_v25 = vand.u32 2147483647, %v542_v17  ;;  %vm548_vm11 = vweird.f32 %v542_v17 }
  0xe4   : > { %v555_v32 = vor.u32 1.1754944e-38, %v554_v23  ;;  %vm553_vm7 = vcmp.eq.f32.partialorder %v552_v25, 8.507059e+37 }
  0xe8   : > { %v1034_v18 = vpop.eup %1033 }
  0xe9   : > { %v544_v19 = vmul.f32 %v1034_v18, %v542_v17  ;;  %vm549_vm10 = vweird.f32 %v1034_v18  ;;  %v956_v17 = vld [vmem:[%s1385_s7] sm:$0xff] }
  0xea   : > { %vm550_vm12 = vmor %vm548_vm11, %vm549_vm10 }
  0xeb   : > { %v545_v20 = vsub.f32 1.0, %v544_v19 }
  0xed   : > { %v546_v24 = vmul.f32 %v1034_v18, %v545_v20 }
  0xef   : > { %v547_v31 = vadd.f32 %v1034_v18, %v546_v24 }
  0xf1   : > { %v551_v33 = vsel %vm550_vm12, %v1034_v18, %v547_v31  ;;  %v957_v18 = vld [vmem:[%s1385_s7 + $0x8] sm:$0xff] }
  0xf2   : > { %v556_v34 = vsel %vm553_vm7, %v555_v32, %v551_v33 }
  0xf3   : > { %v558_v35 = vmul.f32 %v556_v34, %v541_v29 }
  0xf5   : > { %v559_v36 = vpack.c.bf16 %v558_v35, %v558_v35 }
  0xf7   : > { %v566_v22 = vsel %vm564_vm13, %v559_v36, 0 }
  0xf8   : > { %575 = vmatpush.bf16.msra.mxu0 %v566_v22 }
  0xfb   : > { %916 = vmatmul.msk.bf16.vlgmr.msra.gmra.mxu0 %vm560_vm3, %v418_v28 }
 0x121   : > { %v691_v61 = vpop.permute.xlu2 %690 }
 0x129   : > { %v676_v7 = vpop.permute.xlu2 %675 }
 0x131   : > { %v714_v19 = vpop.permute.xlu2 %713 }
 0x135   : > { %v686_v59 = vpop.permute.xlu1 %685 }
 0x139   : > { %v729_v33 = vpop.permute.xlu2 %728 }
 0x13d   : > { %v681_v1 = vpop.permute.xlu1 %680 }
 0x145   : > { %v724_v24 = vpop.permute.xlu1 %723 }
 0x14e   : > { %v621_v54 = vpop.f32.mrf.mxu1 }
 0x151   : > { %v719_v26 = vpop.permute.xlu0 %718 }
 0x156   : > { %v623_v56 = vpop.f32.mrf.mxu1 }
 0x15e   : > { %v626_v60 = vpop.f32.mrf.mxu1 }
 0x166   : > { %v628_v2 = vpop.f32.mrf.mxu1 }
 0x178   : > { %v577_v45 = vpop.f32.mrf.mxu0 }
 0x179   : > { %v585_v46 = vpack.c.bf16 %v577_v45, %v577_v45 }
 0x17b   : > { %v648_v47 = vsel %vm564_vm13, %v585_v46, 0 }
 0x17c   : > { %657 = vmatpush.bf16.msra.mxu2 %v648_v47 }
 0x17f   : > { %935 = vmatmul.msk.bf16.vlgmr.msra.gmra.mxu2 %vm560_vm3, %v952_v48 }
 0x180   : > { %v579_v51 = vpop.f32.mrf.mxu0 }
 0x18f   : > { %936 = vmatmul.msk.bf16.gmra.mxu2 %vm560_vm3, %v953_v53 }
 0x202   : > { %v659_v55 = vpop.f32.mrf.mxu2 }
 0x203   : > { %v660_v4 = vadd.f32 %v659_v55, %v621_v54 }
 0x205   : > { %v693_v10 = vadd.f32 %v676_v7, %v660_v4 }
 0x207   : > { %v697_v15 = vmax.f32 %v693_v10, 0.0 }
 0x20a   : > { %v661_v57 = vpop.f32.mrf.mxu2 }
 0x20b   : > { %v662_v0 = vadd.f32 %v661_v57, %v623_v56 }
 0x20d   : > { %v694_v8 = vadd.f32 %v681_v1, %v662_v0 }
 0x20f   : > { %v698_v13 = vmax.f32 %v694_v8, 0.0 }
 0x211   : > { %v705_v16 = vpack.c.bf16 %v698_v13, %v697_v15 }
 0x212   : > { %v664_v62 = vpop.f32.mrf.mxu2 }
 0x213   : > { %v665_v63 = vadd.f32 %v664_v62, %v626_v60 }
 0x215   : > { %v695_v5 = vadd.f32 %v686_v59, %v665_v63 }
 0x217   : > { %v699_v11 = vmax.f32 %v695_v5, 0.0 }
 0x21a   : > { %v666_v3 = vpop.f32.mrf.mxu2 }
 0x21b   : > { %v667_v6 = vadd.f32 %v666_v3, %v628_v2 }
 0x21d   : > { %v696_v9 = vadd.f32 %v691_v61, %v667_v6 }
 0x21f   : > { %v700_v12 = vmax.f32 %v696_v9, 0.0 }
 0x221   : > { %v706_v14 = vpack.c.bf16 %v700_v12, %v699_v11 }
 0x223   : > { %754 = vmatpush.bf16.msrb.mxu0 %v706_v14  ;;  %959 = vmatpush.bf16.msra.mxu3 %v706_v14 }
 0x227   : > { %755 = vmatpush.bf16.msrb.mxu0 %v705_v16  ;;  %960 = vmatpush.bf16.msra.mxu3 %v705_v16 }
 0x22a   : > { %945 = vmatmul.msk.bf16.vlgmr.msrb.gmra.mxu0 %vm741_vm0, %v956_v17  ;;  %946 = vmatmul.msk.bf16.vlgmr.msra.gmra.mxu3 %vm741_vm0, %v957_v18 }
 0x2a7   : > { %v757_v20 = vpop.f32.mrf.mxu0 }
 0x2a8   : > { %v758_v21 = vadd.f32 %v757_v20, %v714_v19 }
 0x2aa   : > { %v767_v23 = vmax.f32 %v758_v21, 0.0 }
 0x2ac   : > { %771 = vst [vmem:[%s392_s26] sm:$0xff] %v767_v23 }
 0x2ad   : > { %v762_v25 = vpop.f32.mrf.mxu3 }
 0x2ae   : > { %v763_v27 = vadd.f32 %v762_v25, %v724_v24 }
 0x2af   : > { %v759_v30 = vpop.f32.mrf.mxu0 }
 0x2b0   : > { %v769_v31 = vmax.f32 %v763_v27, 0.0  ;;  %v760_v32 = vadd.f32 %v759_v30, %v719_v26 }
 0x2b2   : > { %773 = vst [vmem:[%s392_s26 + $0x10] sm:$0xff] %v769_v31  ;;  %v768_v29 = vmax.f32 %v760_v32, 0.0 }
 0x2b4   : > { %772 = vst [vmem:[%s392_s26 + $0x8] sm:$0xff] %v768_v29 }
 0x2b5   : > { %v764_v34 = vpop.f32.mrf.mxu3 }
 0x2b6   : > { %v765_v35 = vadd.f32 %v764_v34, %v729_v33 }
 0x2b8   : > { %v770_v36 = vmax.f32 %v765_v35, 0.0 }
 0x2ba   : > { %774 = vst [vmem:[%s392_s26 + $0x18] sm:$0xff] %v770_v36 }
 0x2bb   : > { %1062 = shalt.err (!%p1059_p5)
}
 0x2bc   : > { %s1118_s24 = smov 128   ;;  %s1119_s26 = smov 8  }
 0x2bd   : > { %961 = dma.vmem_to_hbm [thread:$0]  (%p1210_p4), %s790_s28, 512, %s792_s18, %s776_s12, %s1118_s24, %s1118_s24, %s1119_s26  }
 0x2be PF: > { %p967_p6 = scmp.ge.s32.totalorder %s1113_s14, 2  ;;  %s806_s16 = sand.u32 1, %s1093_s30  }
 0x2bf   : > { %s807_s0 = scalar_lea.sflag [#allocation3], %s806_s16 }
 0x2c0   : > { %p964_p7 = pnand %p967_p6, %p1217_p8 }
 0x2c2   : > { %p965_p9 = pneg %p964_p7 }
 0x2c4   : > { %1088 = dma.done.wait (%p965_p9), %s807_s0, 512  }
 0x2c5   : > { %1090 = vsyncadd (%p965_p9), %s807_s0, 4294966784  ;;  %s22_s14 = sadd.s32 1, %s1113_s14   ;;  %s1394_s30 = smov %s1097_s10 }
 0x2c6   : > { %p19_p10 = scmp.ge.s32.totalorder %s22_s14, 4   ;;  %s1395_s10 = smov %s1101_s11 }
 0x2c7   : > { %s1396_s11 = smov %s1223_s22  ;;  %s1397_s12 = smov %s1109_s13 }
 0x2c8   : > { %s1398_s13 = smov %s1400_s17  ;;  %21 = sbr.rel (!%p19_p10) target bundleno = 6 (0x6), region = 100 }
 0x2cd   :  { %813 = vsyncpa [#allocation3], 1 }
 0x2ce   :  { %815 = vsyncpa [#allocation3 + $0x1], 1 }

</bundles_post_ra>
